<compile_context>
chip_gen: v7x
topology: tpu7x:2x2x1
jax: 0.10.0
libtpu: 0.0.40
codegen_flags: <defaults>
</compile_context>

<pallas_src>
import jax
import jax.numpy as jnp
import numpy as np
from jax.experimental import pallas as pl
from jax.experimental.pallas import tpu as pltpu

_BLOCK_B = 8  # images per grid step (fills one sublane tile in the row layout)


# ---------------------------------------------------------------------------
# In-kernel layer helpers.  Activations are carried as values of shape
# (rows, Bb, W * ci) where ci stacks [real | imag] channels and a row is
# flattened pixel-major / channel-minor.
# ---------------------------------------------------------------------------
def _down_block(x, wd_ref, bd_ref, relu):
    """Complex Conv2d(k=3, s=2, p=1) as 3 row matmuls; x: (H, Bb, W*ci)."""
    H, Bb, _ = x.shape
    OH = H // 2
    xp = x.reshape(OH, 2, Bb, x.shape[2])          # free split of a non-minor dim
    even = xp[:, 0]                                # input rows 2*oy      (tap i=1)
    odd = xp[:, 1]                                 # input rows 2*oy + 1  (tap i=2)
    zrow = jnp.zeros_like(odd[:1])
    above = jnp.concatenate([zrow, odd[:OH - 1]], axis=0)   # rows 2*oy - 1 (tap i=0)
    m = OH * Bb
    acc = jnp.dot(above.reshape(m, -1), wd_ref[0],
                  preferred_element_type=jnp.float32)
    acc = acc + jnp.dot(even.reshape(m, -1), wd_ref[1],
                        preferred_element_type=jnp.float32)
    acc = acc + jnp.dot(odd.reshape(m, -1), wd_ref[2],
                        preferred_element_type=jnp.float32)
    acc = acc + bd_ref[...]                        # bias pre-tiled per output row
    if relu:
        acc = jnp.maximum(acc, 0.0)
    return acc.reshape(OH, Bb, -1)


def _up_block(x, wu_ref, bu_ref, v_ref, relu):
    """Complex ConvTranspose2d(k=4, s=2, p=1) as 4 row matmuls; x: (I, Bb, I*ci).

    Writes the two output row phases into v_ref[a, r, b, :] (row y = 2a + r)."""
    I, Bb, _ = x.shape
    zrow = jnp.zeros_like(x[:1])
    x_prev = jnp.concatenate([zrow, x[:I - 1]], axis=0)      # input rows a - 1
    x_next = jnp.concatenate([x[1:], zrow], axis=0)          # input rows a + 1
    m = I * Bb
    bias = bu_ref[...]
    # Output row 2a   (r=0): input rows a-1 (ky=3) and a   (ky=1)
    # Output row 2a+1 (r=1): input rows a   (ky=2) and a+1 (ky=0)
    for r, (lhs_a, lhs_b) in enumerate(((x_prev, x), (x, x_next))):
        acc = jnp.dot(lhs_a.reshape(m, -1), wu_ref[r, 0],
                      preferred_element_type=jnp.float32)
        acc = acc + jnp.dot(lhs_b.reshape(m, -1), wu_ref[r, 1],
                            preferred_element_type=jnp.float32)
        acc = acc + bias
        if relu:
            acc = jnp.maximum(acc, 0.0)
        v_ref[:, r] = acc.reshape(I, Bb, -1)


def _ccnn2_kernel(x_ref, wd1, bd1, wd2, bd2, wd3, bd3,
                  wu3, bu3, wu2, bu2, wu1, bu1,
                  out_ref, v3_ref, v2_ref):
    Bb = x_ref.shape[1]
    x = x_ref[...]                                   # (16, Bb, 32)
    o1 = _down_block(x, wd1, bd1, relu=True)         # (8, Bb, 64)
    o2 = _down_block(o1, wd2, bd2, relu=True)        # (4, Bb, 64)
    o3 = _down_block(o2, wd3, bd3, relu=True)        # (2, Bb, 64)
    _up_block(o3, wu3, bu3, v3_ref, relu=True)
    u3 = v3_ref[...].reshape(4, Bb, 64)              # (4, Bb, 64)
    _up_block(u3 + o2, wu2, bu2, v2_ref, relu=True)
    u2 = v2_ref[...].reshape(8, Bb, 64)              # (8, Bb, 64)
    # Last layer (no relu): write its two row phases straight into the output block
    # (shaped (8, 2, Bb, 32)), avoiding an extra VMEM round trip.
    _up_block(u2 + o1, wu1, bu1, out_ref, relu=False)


# ---------------------------------------------------------------------------
# Host-side weight packing: fold the column taps + complex block structure into
# dense "row" matrices (done once per jitted call on tiny tensors).
# ---------------------------------------------------------------------------
def _block_complex(a, b):
    """(..., ci_c, co_c) real/imag blocks -> (..., 2ci_c, 2co_c) [[a, b], [-b, a]]."""
    top = jnp.concatenate([a, b], axis=-1)
    bot = jnp.concatenate([-b, a], axis=-1)
    return jnp.concatenate([top, bot], axis=-2)


def _pack_down(p, W):
    """ComplexConv2d(k=3, s=2, p=1) -> row-tap matrices (3, W*ci, OW*co) + bias row."""
    wr, wi, br, bi = p                               # wr: (out_c, in_c, 3, 3)
    out_c, in_c = wr.shape[0], wr.shape[1]
    ci, co, OW = 2 * in_c, 2 * out_c, W // 2
    blk = _block_complex(jnp.transpose(wr, (2, 3, 1, 0)),
                         jnp.transpose(wi, (2, 3, 1, 0)))    # (3, 3, ci, co)
    sel = np.zeros((3, W, OW), np.float32)           # sel[j, w_pos, ox]
    for j in range(3):
        for ox in range(OW):
            w_pos = 2 * ox + j - 1
            if 0 <= w_pos < W:
                sel[j, w_pos, ox] = 1.0
    wrow = jnp.einsum('jpo,ijab->ipaob', jnp.asarray(sel), blk)
    wrow = wrow.reshape(3, W * ci, OW * co)
    bias = jnp.concatenate([br - bi, br + bi])       # stacked complex bias
    brow = jnp.tile(bias, (OW,)).reshape(1, OW * co)
    return wrow, brow


def _pack_up(p, I):
    """ComplexConvTranspose2d(k=4, s=2, p=1) -> (2, 2, I*ci, 2I*co) row matrices."""
    wr, wi, br, bi = p                               # wr: (in_c, out_c, 4, 4)
    in_c, out_c = wr.shape[0], wr.shape[1]
    ci, co, OW = 2 * in_c, 2 * out_c, 2 * I
    blk = _block_complex(jnp.transpose(wr, (2, 3, 0, 1)),
                         jnp.transpose(wi, (2, 3, 0, 1)))    # (4, 4, ci, co)
    sel = np.zeros((4, I, OW), np.float32)           # sel[kx, ix, x], kx = x - 2ix + 1
    for ix in range(I):
        for x in range(OW):
            kx = x - 2 * ix + 1
            if 0 <= kx < 4:
                sel[kx, ix, x] = 1.0
    sel = jnp.asarray(sel)
    # Output row 2a+r: r=0 <- input rows a-1 (ky=3), a (ky=1);
    #                  r=1 <- input rows a (ky=2), a+1 (ky=0).
    ky_map = ((3, 1), (2, 0))
    mats = []
    for r in range(2):
        row = []
        for m in range(2):
            u = jnp.einsum('kix,kab->iaxb', sel, blk[ky_map[r][m]])
            row.append(u.reshape(I * ci, OW * co))
        mats.append(jnp.stack(row))
    wrow = jnp.stack(mats)                           # (2, 2, I*ci, OW*co)
    bias = jnp.concatenate([br - bi, br + bi])
    brow = jnp.tile(bias, (OW,)).reshape(1, OW * co)
    return wrow, brow


# ---------------------------------------------------------------------------
# Wrapper
# ---------------------------------------------------------------------------
def _ccnn2_complex(params, xr, xi, block_b=_BLOCK_B):
    """Runs the fused kernel; returns the complex output as (N, 16, 16, 2)."""
    n = xr.shape[0]
    # Stacked-complex rows: x[h, image, 2*w + {0: re, 1: im}]; shipped with the batch
    # as the contiguous DMA axis (1 KiB per row per grid step).
    x = jnp.stack([xr[:, 0], xi[:, 0]], axis=-1)               # (N, 16, 16, 2)
    x = jnp.transpose(x.reshape(n, 16, 32), (1, 0, 2))         # (16, N, 32)
    n_pad = ((n + block_b - 1) // block_b) * block_b
    if n_pad != n:
        x = jnp.pad(x, ((0, 0), (0, n_pad - n), (0, 0)))
    grid = (n_pad // block_b,)

    wd1, bd1 = _pack_down(params["down1"], W=16)
    wd2, bd2 = _pack_down(params["down2"], W=8)
    wd3, bd3 = _pack_down(params["down3"], W=4)
    wu3, bu3 = _pack_up(params["up3"], I=2)
    wu2, bu2 = _pack_up(params["up2"], I=4)
    wu1, bu1 = _pack_up(params["up1"], I=8)
    weights = [wd1, bd1, wd2, bd2, wd3, bd3, wu3, bu3, wu2, bu2, wu1, bu1]

    def _const_spec(a):
        nd = a.ndim
        return pl.BlockSpec(a.shape, lambda i, _nd=nd: (0,) * _nd)

    out = pl.pallas_call(
        _ccnn2_kernel,
        grid=grid,
        in_specs=[pl.BlockSpec((16, block_b, 32), lambda i: (0, i, 0))]
                 + [_const_spec(a) for a in weights],
        out_specs=pl.BlockSpec((8, 2, block_b, 32), lambda i: (0, 0, i, 0)),
        out_shape=jax.ShapeDtypeStruct((8, 2, n_pad, 32), jnp.float32),
        scratch_shapes=[pltpu.VMEM((2, 2, block_b, 64), jnp.float32),   # up3 phases
                        pltpu.VMEM((4, 2, block_b, 64), jnp.float32)],  # up2 phases
        compiler_params=pltpu.CompilerParams(
            dimension_semantics=("parallel",)),
    )(x, *weights)

    out = out.reshape(16, n_pad, 32)                           # rows y = 2a + r
    out = jnp.transpose(out, (1, 0, 2))[:n].reshape(n, 16, 16, 2)
    return out


def ccnn2_forward(params, xr, xi):
    out = _ccnn2_complex(params, xr, xi)
    # TODO(synk): arctan2 epilogue kept in plain JAX (tiny elementwise op; atan2
    # lowering inside Mosaic is not guaranteed on all TPU generations).
    holophase = jnp.arctan2(out[..., 1], out[..., 0])          # (N, 16, 16)
    return holophase[:, None, :, :]                            # (N, 1, 16, 16)


# ---------------------------------------------------------------------------
# Parameter init (deterministic, mirrors the PyTorch layer shapes).
# ---------------------------------------------------------------------------
def init_params(key):
    def conv_p(k, cout, cin, ks):
        k1, k2, k3, k4 = jax.random.split(k, 4)
        s = 1.0 / (cin * ks * ks) ** 0.5
        return (jax.random.uniform(k1, (cout, cin, ks, ks), jnp.float32, -s, s),
                jax.random.uniform(k2, (cout, cin, ks, ks), jnp.float32, -s, s),
                jax.random.uniform(k3, (cout,), jnp.float32, -s, s),
                jax.random.uniform(k4, (cout,), jnp.float32, -s, s))

    def convt_p(k, cin, cout, ks):
        k1, k2, k3, k4 = jax.random.split(k, 4)
        s = 1.0 / (cin * ks * ks) ** 0.5
        return (jax.random.uniform(k1, (cin, cout, ks, ks), jnp.float32, -s, s),
                jax.random.uniform(k2, (cin, cout, ks, ks), jnp.float32, -s, s),
                jax.random.uniform(k3, (cout,), jnp.float32, -s, s),
                jax.random.uniform(k4, (cout,), jnp.float32, -s, s))

    keys = jax.random.split(key, 6)
    return {
        "down1": conv_p(keys[0], 4, 1, 3),    # ComplexConv2d(1, 4, 3, s=2, p=1)
        "down2": conv_p(keys[1], 8, 4, 3),    # ComplexConv2d(4, 8, 3, s=2, p=1)
        "down3": conv_p(keys[2], 16, 8, 3),   # ComplexConv2d(8, 16, 3, s=2, p=1)
        "up3": convt_p(keys[3], 16, 8, 4),    # ComplexConvTranspose2d(16, 8, 4, s=2, p=1)
        "up2": convt_p(keys[4], 8, 4, 4),     # ComplexConvTranspose2d(8, 4, 4, s=2, p=1)
        "up1": convt_p(keys[5], 4, 1, 4),     # ComplexConvTranspose2d(4, 1, 4, s=2, p=1)
    }


# ---------------------------------------------------------------------------
# Pure-JAX reference (same complex-conv semantics) for an in-script check.
# ---------------------------------------------------------------------------
def _cconv_ref(xr, xi, p):
    wr, wi, br, bi = p

    def conv(x, w):
        oh, ow = x.shape[2] // 2, x.shape[3] // 2
        xp = jnp.pad(x, ((0, 0), (0, 0), (1, 1), (1, 1)))
        out = 0.0
        for i in range(3):
            for j in range(3):
                win = xp[:, :, i:i + 2 * oh:2, j:j + 2 * ow:2]
                out = out + jnp.einsum('nchw,oc->nohw', win, w[:, :, i, j])
        return out

    rr = conv(xr, wr) - conv(xi, wi) + (br - bi)[None, :, None, None]
    ii = conv(xi, wr) + conv(xr, wi) + (br + bi)[None, :, None, None]
    return rr, ii


def _cconvT_ref(xr, xi, p):
    wr, wi, br, bi = p

    def convt(x, w):
        n, _, s, _ = x.shape
        o = 2 * s
        full = jnp.zeros((n, w.shape[1], o + 2, o + 2), jnp.float32)
        for ky in range(4):
            for kx in range(4):
                c = jnp.einsum('nchw,co->nohw', x, w[:, :, ky, kx])
                full = full.at[:, :, ky:ky + 2 * s:2, kx:kx + 2 * s:2].add(c)
        return full[:, :, 1:1 + o, 1:1 + o]

    rr = convt(xr, wr) - convt(xi, wi) + (br - bi)[None, :, None, None]
    ii = convt(xi, wr) + convt(xr, wi) + (br + bi)[None, :, None, None]
    return rr, ii


def _crelu(r, i):
    return jnp.maximum(r, 0.0), jnp.maximum(i, 0.0)


def ccnn2_reference_complex(params, xr, xi):
    r1, i1 = _crelu(*_cconv_ref(xr, xi, params["down1"]))
    r2, i2 = _crelu(*_cconv_ref(r1, i1, params["down2"]))
    r3, i3 = _crelu(*_cconv_ref(r2, i2, params["down3"]))
    r, i = _crelu(*_cconvT_ref(r3, i3, params["up3"]))
    r, i = _crelu(*_cconvT_ref(r + r2, i + i2, params["up2"]))
    r, i = _cconvT_ref(r + r1, i + i1, params["up1"])
    return r, i


if __name__ == "__main__":
    key = jax.random.PRNGKey(0)
    kp, kr, ki = jax.random.split(key, 3)
    params = init_params(kp)
    # Complex input (N=16, C=1, H=16, W=16) as real/imag parts -> grid of 2 parallel steps.
    n = 16
    xr = jax.random.normal(kr, (n, 1, 16, 16), jnp.float32)
    xi = jax.random.normal(ki, (n, 1, 16, 16), jnp.float32)

    out = jax.jit(ccnn2_forward)(params, xr, xi)
    out = jax.block_until_ready(out)
    assert out.shape == (n, 1, 16, 16)
    assert out.dtype == jnp.float32

    # Numerical check of the fused kernel against the pure-JAX reference
    # (compared on the pre-atan2 complex output to avoid phase-wrap issues).
    kc = jax.jit(_ccnn2_complex)(params, xr, xi)
    rr, ri = jax.jit(ccnn2_reference_complex)(params, xr, xi)
    ref = jnp.stack([rr[:, 0], ri[:, 0]], axis=-1)
    err = float(jnp.max(jnp.abs(kc - ref)))
    assert err < 1e-2, f"kernel/reference mismatch: max abs err = {err}"

    print("KERNEL_OK")
</pallas_src>

<mosaic_0001>
module attributes {stable_mosaic.version = 11 : i64} {
  func.func @_ccnn2_kernel(%arg0: i32, %arg1: memref<16x8x32xf32, #tpu.memory_space<vmem>>, %arg2: memref<3x32x64xf32, #tpu.memory_space<vmem>>, %arg3: memref<1x64xf32, #tpu.memory_space<vmem>>, %arg4: memref<3x64x64xf32, #tpu.memory_space<vmem>>, %arg5: memref<1x64xf32, #tpu.memory_space<vmem>>, %arg6: memref<3x64x64xf32, #tpu.memory_space<vmem>>, %arg7: memref<1x64xf32, #tpu.memory_space<vmem>>, %arg8: memref<2x2x64x64xf32, #tpu.memory_space<vmem>>, %arg9: memref<1x64xf32, #tpu.memory_space<vmem>>, %arg10: memref<2x2x64x64xf32, #tpu.memory_space<vmem>>, %arg11: memref<1x64xf32, #tpu.memory_space<vmem>>, %arg12: memref<2x2x64x32xf32, #tpu.memory_space<vmem>>, %arg13: memref<1x32xf32, #tpu.memory_space<vmem>>, %arg14: memref<8x2x8x32xf32, #tpu.memory_space<vmem>>, %arg15: memref<2x2x8x64xf32, #tpu.memory_space<vmem>>, %arg16: memref<4x2x8x64xf32, #tpu.memory_space<vmem>>) attributes {dimension_semantics = [#tpu.dimension_semantics<parallel>], iteration_bounds = array<i64: 2>, scalar_prefetch = 0 : i64, scratch_operands = 2 : i64, tpu.core_type = #tpu.core_type<tc>, window_params = [{transform_indices = @transform_0, window_bounds = array<i64: 16, 8, 32>}, {pipeline_mode = #tpu.pipeline_mode<synchronous>, transform_indices = @transform_1, window_bounds = array<i64: 3, 32, 64>}, {pipeline_mode = #tpu.pipeline_mode<synchronous>, transform_indices = @transform_2, window_bounds = array<i64: 1, 64>}, {pipeline_mode = #tpu.pipeline_mode<synchronous>, transform_indices = @transform_3, window_bounds = array<i64: 3, 64, 64>}, {pipeline_mode = #tpu.pipeline_mode<synchronous>, transform_indices = @transform_4, window_bounds = array<i64: 1, 64>}, {pipeline_mode = #tpu.pipeline_mode<synchronous>, transform_indices = @transform_5, window_bounds = array<i64: 3, 64, 64>}, {pipeline_mode = #tpu.pipeline_mode<synchronous>, transform_indices = @transform_6, window_bounds = array<i64: 1, 64>}, {pipeline_mode = #tpu.pipeline_mode<synchronous>, transform_indices = @transform_7, window_bounds = array<i64: 2, 2, 64, 64>}, {pipeline_mode = #tpu.pipeline_mode<synchronous>, transform_indices = @transform_8, window_bounds = array<i64: 1, 64>}, {pipeline_mode = #tpu.pipeline_mode<synchronous>, transform_indices = @transform_9, window_bounds = array<i64: 2, 2, 64, 64>}, {pipeline_mode = #tpu.pipeline_mode<synchronous>, transform_indices = @transform_10, window_bounds = array<i64: 1, 64>}, {pipeline_mode = #tpu.pipeline_mode<synchronous>, transform_indices = @transform_11, window_bounds = array<i64: 2, 2, 64, 32>}, {pipeline_mode = #tpu.pipeline_mode<synchronous>, transform_indices = @transform_12, window_bounds = array<i64: 1, 32>}, {transform_indices = @transform_13, window_bounds = array<i64: 8, 2, 8, 32>}]} {
    %c0 = arith.constant 0 : index
    %c0_0 = arith.constant 0 : index
    %c0_1 = arith.constant 0 : index
    %0 = vector.load %arg1[%c0, %c0_0, %c0_1] : memref<16x8x32xf32, #tpu.memory_space<vmem>>, vector<16x8x32xf32>
    %1 = vector.shape_cast %0 : vector<16x8x32xf32> to vector<8x2x8x32xf32>
    %2 = vector.extract_strided_slice %1 {offsets = [0, 0, 0, 0], sizes = [8, 1, 8, 32], strides = [1, 1, 1, 1]} : vector<8x2x8x32xf32> to vector<8x1x8x32xf32>
    %3 = vector.shape_cast %2 : vector<8x1x8x32xf32> to vector<8x8x32xf32>
    %4 = vector.extract_strided_slice %1 {offsets = [0, 1, 0, 0], sizes = [8, 1, 8, 32], strides = [1, 1, 1, 1]} : vector<8x2x8x32xf32> to vector<8x1x8x32xf32>
    %5 = vector.shape_cast %4 : vector<8x1x8x32xf32> to vector<8x8x32xf32>
    %cst = arith.constant 0.000000e+00 : f32
    %6 = vector.broadcast %cst : f32 to vector<1x8x32xf32>
    %7 = vector.extract_strided_slice %5 {offsets = [0, 0, 0], sizes = [7, 8, 32], strides = [1, 1, 1]} : vector<8x8x32xf32> to vector<7x8x32xf32>
    %8 = tpu.concatenate %6, %7 in 0 : vector<1x8x32xf32>, vector<7x8x32xf32> -> vector<8x8x32xf32>
    %9 = vector.shape_cast %8 : vector<8x8x32xf32> to vector<64x32xf32>
    %c0_2 = arith.constant 0 : index
    %c0_3 = arith.constant 0 : index
    %c0_4 = arith.constant 0 : index
    %10 = vector.load %arg2[%c0_2, %c0_3, %c0_4] : memref<3x32x64xf32, #tpu.memory_space<vmem>>, vector<1x32x64xf32>
    %11 = vector.shape_cast %10 : vector<1x32x64xf32> to vector<32x64xf32>
    %cst_5 = arith.constant dense<0.000000e+00> : vector<64x64xf32>
    %12 = tpu.matmul %9, %11, %cst_5 {dimension_numbers = #tpu.dot_dimension_numbers<[1], [0], [0], [1], [0, 0, 1, 1], [], []>} : vector<64x32xf32>, vector<32x64xf32>, vector<64x64xf32> -> vector<64x64xf32>
    %13 = vector.shape_cast %3 : vector<8x8x32xf32> to vector<64x32xf32>
    %c1 = arith.constant 1 : index
    %c0_6 = arith.constant 0 : index
    %c0_7 = arith.constant 0 : index
    %14 = vector.load %arg2[%c1, %c0_6, %c0_7] : memref<3x32x64xf32, #tpu.memory_space<vmem>>, vector<1x32x64xf32>
    %15 = vector.shape_cast %14 : vector<1x32x64xf32> to vector<32x64xf32>
    %cst_8 = arith.constant dense<0.000000e+00> : vector<64x64xf32>
    %16 = tpu.matmul %13, %15, %cst_8 {dimension_numbers = #tpu.dot_dimension_numbers<[1], [0], [0], [1], [0, 0, 1, 1], [], []>} : vector<64x32xf32>, vector<32x64xf32>, vector<64x64xf32> -> vector<64x64xf32>
    %17 = arith.addf %12, %16 : vector<64x64xf32>
    %18 = vector.shape_cast %5 : vector<8x8x32xf32> to vector<64x32xf32>
    %c2 = arith.constant 2 : index
    %c0_9 = arith.constant 0 : index
    %c0_10 = arith.constant 0 : index
    %19 = vector.load %arg2[%c2, %c0_9, %c0_10] : memref<3x32x64xf32, #tpu.memory_space<vmem>>, vector<1x32x64xf32>
    %20 = vector.shape_cast %19 : vector<1x32x64xf32> to vector<32x64xf32>
    %cst_11 = arith.constant dense<0.000000e+00> : vector<64x64xf32>
    %21 = tpu.matmul %18, %20, %cst_11 {dimension_numbers = #tpu.dot_dimension_numbers<[1], [0], [0], [1], [0, 0, 1, 1], [], []>} : vector<64x32xf32>, vector<32x64xf32>, vector<64x64xf32> -> vector<64x64xf32>
    %22 = arith.addf %17, %21 : vector<64x64xf32>
    %c0_12 = arith.constant 0 : index
    %c0_13 = arith.constant 0 : index
    %23 = vector.load %arg3[%c0_12, %c0_13] : memref<1x64xf32, #tpu.memory_space<vmem>>, vector<1x64xf32>
    %24 = vector.broadcast %23 : vector<1x64xf32> to vector<64x64xf32>
    %25 = arith.addf %22, %24 : vector<64x64xf32>
    %cst_14 = arith.constant 0.000000e+00 : f32
    %26 = vector.broadcast %cst_14 : f32 to vector<64x64xf32>
    %27 = arith.maximumf %25, %26 : vector<64x64xf32>
    %28 = vector.shape_cast %27 : vector<64x64xf32> to vector<8x8x64xf32>
    %29 = vector.shape_cast %28 : vector<8x8x64xf32> to vector<4x2x8x64xf32>
    %30 = vector.extract_strided_slice %29 {offsets = [0, 0, 0, 0], sizes = [4, 1, 8, 64], strides = [1, 1, 1, 1]} : vector<4x2x8x64xf32> to vector<4x1x8x64xf32>
    %31 = vector.shape_cast %30 : vector<4x1x8x64xf32> to vector<4x8x64xf32>
    %32 = vector.extract_strided_slice %29 {offsets = [0, 1, 0, 0], sizes = [4, 1, 8, 64], strides = [1, 1, 1, 1]} : vector<4x2x8x64xf32> to vector<4x1x8x64xf32>
    %33 = vector.shape_cast %32 : vector<4x1x8x64xf32> to vector<4x8x64xf32>
    %cst_15 = arith.constant 0.000000e+00 : f32
    %34 = vector.broadcast %cst_15 : f32 to vector<1x8x64xf32>
    %35 = vector.extract_strided_slice %33 {offsets = [0, 0, 0], sizes = [3, 8, 64], strides = [1, 1, 1]} : vector<4x8x64xf32> to vector<3x8x64xf32>
    %36 = tpu.concatenate %34, %35 in 0 : vector<1x8x64xf32>, vector<3x8x64xf32> -> vector<4x8x64xf32>
    %37 = vector.shape_cast %36 : vector<4x8x64xf32> to vector<32x64xf32>
    %c0_16 = arith.constant 0 : index
    %c0_17 = arith.constant 0 : index
    %c0_18 = arith.constant 0 : index
    %38 = vector.load %arg4[%c0_16, %c0_17, %c0_18] : memref<3x64x64xf32, #tpu.memory_space<vmem>>, vector<1x64x64xf32>
    %39 = vector.shape_cast %38 : vector<1x64x64xf32> to vector<64x64xf32>
    %cst_19 = arith.constant dense<0.000000e+00> : vector<32x64xf32>
    %40 = tpu.matmul %37, %39, %cst_19 {dimension_numbers = #tpu.dot_dimension_numbers<[1], [0], [0], [1], [0, 0, 1, 1], [], []>} : vector<32x64xf32>, vector<64x64xf32>, vector<32x64xf32> -> vector<32x64xf32>
    %41 = vector.shape_cast %31 : vector<4x8x64xf32> to vector<32x64xf32>
    %c1_20 = arith.constant 1 : index
    %c0_21 = arith.constant 0 : index
    %c0_22 = arith.constant 0 : index
    %42 = vector.load %arg4[%c1_20, %c0_21, %c0_22] : memref<3x64x64xf32, #tpu.memory_space<vmem>>, vector<1x64x64xf32>
    %43 = vector.shape_cast %42 : vector<1x64x64xf32> to vector<64x64xf32>
    %cst_23 = arith.constant dense<0.000000e+00> : vector<32x64xf32>
    %44 = tpu.matmul %41, %43, %cst_23 {dimension_numbers = #tpu.dot_dimension_numbers<[1], [0], [0], [1], [0, 0, 1, 1], [], []>} : vector<32x64xf32>, vector<64x64xf32>, vector<32x64xf32> -> vector<32x64xf32>
    %45 = arith.addf %40, %44 : vector<32x64xf32>
    %46 = vector.shape_cast %33 : vector<4x8x64xf32> to vector<32x64xf32>
    %c2_24 = arith.constant 2 : index
    %c0_25 = arith.constant 0 : index
    %c0_26 = arith.constant 0 : index
    %47 = vector.load %arg4[%c2_24, %c0_25, %c0_26] : memref<3x64x64xf32, #tpu.memory_space<vmem>>, vector<1x64x64xf32>
    %48 = vector.shape_cast %47 : vector<1x64x64xf32> to vector<64x64xf32>
    %cst_27 = arith.constant dense<0.000000e+00> : vector<32x64xf32>
    %49 = tpu.matmul %46, %48, %cst_27 {dimension_numbers = #tpu.dot_dimension_numbers<[1], [0], [0], [1], [0, 0, 1, 1], [], []>} : vector<32x64xf32>, vector<64x64xf32>, vector<32x64xf32> -> vector<32x64xf32>
    %50 = arith.addf %45, %49 : vector<32x64xf32>
    %c0_28 = arith.constant 0 : index
    %c0_29 = arith.constant 0 : index
    %51 = vector.load %arg5[%c0_28, %c0_29] : memref<1x64xf32, #tpu.memory_space<vmem>>, vector<1x64xf32>
    %52 = vector.broadcast %51 : vector<1x64xf32> to vector<32x64xf32>
    %53 = arith.addf %50, %52 : vector<32x64xf32>
    %cst_30 = arith.constant 0.000000e+00 : f32
    %54 = vector.broadcast %cst_30 : f32 to vector<32x64xf32>
    %55 = arith.maximumf %53, %54 : vector<32x64xf32>
    %56 = vector.shape_cast %55 : vector<32x64xf32> to vector<4x8x64xf32>
    %57 = vector.shape_cast %56 : vector<4x8x64xf32> to vector<2x2x8x64xf32>
    %58 = vector.extract_strided_slice %57 {offsets = [0, 0, 0, 0], sizes = [2, 1, 8, 64], strides = [1, 1, 1, 1]} : vector<2x2x8x64xf32> to vector<2x1x8x64xf32>
    %59 = vector.shape_cast %58 : vector<2x1x8x64xf32> to vector<2x8x64xf32>
    %60 = vector.extract_strided_slice %57 {offsets = [0, 1, 0, 0], sizes = [2, 1, 8, 64], strides = [1, 1, 1, 1]} : vector<2x2x8x64xf32> to vector<2x1x8x64xf32>
    %61 = vector.shape_cast %60 : vector<2x1x8x64xf32> to vector<2x8x64xf32>
    %cst_31 = arith.constant 0.000000e+00 : f32
    %62 = vector.broadcast %cst_31 : f32 to vector<1x8x64xf32>
    %63 = vector.extract_strided_slice %61 {offsets = [0, 0, 0], sizes = [1, 8, 64], strides = [1, 1, 1]} : vector<2x8x64xf32> to vector<1x8x64xf32>
    %64 = tpu.concatenate %62, %63 in 0 : vector<1x8x64xf32>, vector<1x8x64xf32> -> vector<2x8x64xf32>
    %65 = vector.shape_cast %64 : vector<2x8x64xf32> to vector<16x64xf32>
    %c0_32 = arith.constant 0 : index
    %c0_33 = arith.constant 0 : index
    %c0_34 = arith.constant 0 : index
    %66 = vector.load %arg6[%c0_32, %c0_33, %c0_34] : memref<3x64x64xf32, #tpu.memory_space<vmem>>, vector<1x64x64xf32>
    %67 = vector.shape_cast %66 : vector<1x64x64xf32> to vector<64x64xf32>
    %cst_35 = arith.constant dense<0.000000e+00> : vector<16x64xf32>
    %68 = tpu.matmul %65, %67, %cst_35 {dimension_numbers = #tpu.dot_dimension_numbers<[1], [0], [0], [1], [0, 0, 1, 1], [], []>} : vector<16x64xf32>, vector<64x64xf32>, vector<16x64xf32> -> vector<16x64xf32>
    %69 = vector.shape_cast %59 : vector<2x8x64xf32> to vector<16x64xf32>
    %c1_36 = arith.constant 1 : index
    %c0_37 = arith.constant 0 : index
    %c0_38 = arith.constant 0 : index
    %70 = vector.load %arg6[%c1_36, %c0_37, %c0_38] : memref<3x64x64xf32, #tpu.memory_space<vmem>>, vector<1x64x64xf32>
    %71 = vector.shape_cast %70 : vector<1x64x64xf32> to vector<64x64xf32>
    %cst_39 = arith.constant dense<0.000000e+00> : vector<16x64xf32>
    %72 = tpu.matmul %69, %71, %cst_39 {dimension_numbers = #tpu.dot_dimension_numbers<[1], [0], [0], [1], [0, 0, 1, 1], [], []>} : vector<16x64xf32>, vector<64x64xf32>, vector<16x64xf32> -> vector<16x64xf32>
    %73 = arith.addf %68, %72 : vector<16x64xf32>
    %74 = vector.shape_cast %61 : vector<2x8x64xf32> to vector<16x64xf32>
    %c2_40 = arith.constant 2 : index
    %c0_41 = arith.constant 0 : index
    %c0_42 = arith.constant 0 : index
    %75 = vector.load %arg6[%c2_40, %c0_41, %c0_42] : memref<3x64x64xf32, #tpu.memory_space<vmem>>, vector<1x64x64xf32>
    %76 = vector.shape_cast %75 : vector<1x64x64xf32> to vector<64x64xf32>
    %cst_43 = arith.constant dense<0.000000e+00> : vector<16x64xf32>
    %77 = tpu.matmul %74, %76, %cst_43 {dimension_numbers = #tpu.dot_dimension_numbers<[1], [0], [0], [1], [0, 0, 1, 1], [], []>} : vector<16x64xf32>, vector<64x64xf32>, vector<16x64xf32> -> vector<16x64xf32>
    %78 = arith.addf %73, %77 : vector<16x64xf32>
    %c0_44 = arith.constant 0 : index
    %c0_45 = arith.constant 0 : index
    %79 = vector.load %arg7[%c0_44, %c0_45] : memref<1x64xf32, #tpu.memory_space<vmem>>, vector<1x64xf32>
    %80 = vector.broadcast %79 : vector<1x64xf32> to vector<16x64xf32>
    %81 = arith.addf %78, %80 : vector<16x64xf32>
    %cst_46 = arith.constant 0.000000e+00 : f32
    %82 = vector.broadcast %cst_46 : f32 to vector<16x64xf32>
    %83 = arith.maximumf %81, %82 : vector<16x64xf32>
    %84 = vector.shape_cast %83 : vector<16x64xf32> to vector<2x8x64xf32>
    %cst_47 = arith.constant 0.000000e+00 : f32
    %85 = vector.broadcast %cst_47 : f32 to vector<1x8x64xf32>
    %86 = vector.extract_strided_slice %84 {offsets = [0, 0, 0], sizes = [1, 8, 64], strides = [1, 1, 1]} : vector<2x8x64xf32> to vector<1x8x64xf32>
    %87 = tpu.concatenate %85, %86 in 0 : vector<1x8x64xf32>, vector<1x8x64xf32> -> vector<2x8x64xf32>
    %88 = vector.extract_strided_slice %84 {offsets = [1, 0, 0], sizes = [1, 8, 64], strides = [1, 1, 1]} : vector<2x8x64xf32> to vector<1x8x64xf32>
    %89 = tpu.concatenate %88, %85 in 0 : vector<1x8x64xf32>, vector<1x8x64xf32> -> vector<2x8x64xf32>
    %c0_48 = arith.constant 0 : index
    %c0_49 = arith.constant 0 : index
    %90 = vector.load %arg9[%c0_48, %c0_49] : memref<1x64xf32, #tpu.memory_space<vmem>>, vector<1x64xf32>
    %91 = vector.shape_cast %87 : vector<2x8x64xf32> to vector<16x64xf32>
    %c0_50 = arith.constant 0 : index
    %c0_51 = arith.constant 0 : index
    %c0_52 = arith.constant 0 : index
    %c0_53 = arith.constant 0 : index
    %92 = vector.load %arg8[%c0_50, %c0_51, %c0_52, %c0_53] : memref<2x2x64x64xf32, #tpu.memory_space<vmem>>, vector<1x1x64x64xf32>
    %93 = vector.shape_cast %92 : vector<1x1x64x64xf32> to vector<64x64xf32>
    %cst_54 = arith.constant dense<0.000000e+00> : vector<16x64xf32>
    %94 = tpu.matmul %91, %93, %cst_54 {dimension_numbers = #tpu.dot_dimension_numbers<[1], [0], [0], [1], [0, 0, 1, 1], [], []>} : vector<16x64xf32>, vector<64x64xf32>, vector<16x64xf32> -> vector<16x64xf32>
    %95 = vector.shape_cast %84 : vector<2x8x64xf32> to vector<16x64xf32>
    %c0_55 = arith.constant 0 : index
    %c1_56 = arith.constant 1 : index
    %c0_57 = arith.constant 0 : index
    %c0_58 = arith.constant 0 : index
    %96 = vector.load %arg8[%c0_55, %c1_56, %c0_57, %c0_58] : memref<2x2x64x64xf32, #tpu.memory_space<vmem>>, vector<1x1x64x64xf32>
    %97 = vector.shape_cast %96 : vector<1x1x64x64xf32> to vector<64x64xf32>
    %cst_59 = arith.constant dense<0.000000e+00> : vector<16x64xf32>
    %98 = tpu.matmul %95, %97, %cst_59 {dimension_numbers = #tpu.dot_dimension_numbers<[1], [0], [0], [1], [0, 0, 1, 1], [], []>} : vector<16x64xf32>, vector<64x64xf32>, vector<16x64xf32> -> vector<16x64xf32>
    %99 = arith.addf %94, %98 : vector<16x64xf32>
    %100 = vector.broadcast %90 : vector<1x64xf32> to vector<16x64xf32>
    %101 = arith.addf %99, %100 : vector<16x64xf32>
    %cst_60 = arith.constant 0.000000e+00 : f32
    %102 = vector.broadcast %cst_60 : f32 to vector<16x64xf32>
    %103 = arith.maximumf %101, %102 : vector<16x64xf32>
    %104 = vector.shape_cast %103 : vector<16x64xf32> to vector<2x8x64xf32>
    %c0_61 = arith.constant 0 : index
    %c0_62 = arith.constant 0 : index
    %c0_63 = arith.constant 0 : index
    %c0_64 = arith.constant 0 : index
    %105 = vector.load %arg15[%c0_61, %c0_62, %c0_63, %c0_64] : memref<2x2x8x64xf32, #tpu.memory_space<vmem>>, vector<2x1x8x64xf32>
    %106 = vector.shape_cast %105 : vector<2x1x8x64xf32> to vector<2x8x64xf32>
    %107 = vector.shape_cast %104 : vector<2x8x64xf32> to vector<2x1x8x64xf32>
    tpu.vector_store %arg15[%c0_61, %c0_62, %c0_63, %c0_64], %107 {strides = array<i32>} : memref<2x2x8x64xf32, #tpu.memory_space<vmem>>, vector<2x1x8x64xf32>,
    %108 = vector.shape_cast %84 : vector<2x8x64xf32> to vector<16x64xf32>
    %c1_65 = arith.constant 1 : index
    %c0_66 = arith.constant 0 : index
    %c0_67 = arith.constant 0 : index
    %c0_68 = arith.constant 0 : index
    %109 = vector.load %arg8[%c1_65, %c0_66, %c0_67, %c0_68] : memref<2x2x64x64xf32, #tpu.memory_space<vmem>>, vector<1x1x64x64xf32>
    %110 = vector.shape_cast %109 : vector<1x1x64x64xf32> to vector<64x64xf32>
    %cst_69 = arith.constant dense<0.000000e+00> : vector<16x64xf32>
    %111 = tpu.matmul %108, %110, %cst_69 {dimension_numbers = #tpu.dot_dimension_numbers<[1], [0], [0], [1], [0, 0, 1, 1], [], []>} : vector<16x64xf32>, vector<64x64xf32>, vector<16x64xf32> -> vector<16x64xf32>
    %112 = vector.shape_cast %89 : vector<2x8x64xf32> to vector<16x64xf32>
    %c1_70 = arith.constant 1 : index
    %c1_71 = arith.constant 1 : index
    %c0_72 = arith.constant 0 : index
    %c0_73 = arith.constant 0 : index
    %113 = vector.load %arg8[%c1_70, %c1_71, %c0_72, %c0_73] : memref<2x2x64x64xf32, #tpu.memory_space<vmem>>, vector<1x1x64x64xf32>
    %114 = vector.shape_cast %113 : vector<1x1x64x64xf32> to vector<64x64xf32>
    %cst_74 = arith.constant dense<0.000000e+00> : vector<16x64xf32>
    %115 = tpu.matmul %112, %114, %cst_74 {dimension_numbers = #tpu.dot_dimension_numbers<[1], [0], [0], [1], [0, 0, 1, 1], [], []>} : vector<16x64xf32>, vector<64x64xf32>, vector<16x64xf32> -> vector<16x64xf32>
    %116 = arith.addf %111, %115 : vector<16x64xf32>
    %117 = vector.broadcast %90 : vector<1x64xf32> to vector<16x64xf32>
    %118 = arith.addf %116, %117 : vector<16x64xf32>
    %cst_75 = arith.constant 0.000000e+00 : f32
    %119 = vector.broadcast %cst_75 : f32 to vector<16x64xf32>
    %120 = arith.maximumf %118, %119 : vector<16x64xf32>
    %121 = vector.shape_cast %120 : vector<16x64xf32> to vector<2x8x64xf32>
    %c0_76 = arith.constant 0 : index
    %c1_77 = arith.constant 1 : index
    %c0_78 = arith.constant 0 : index
    %c0_79 = arith.constant 0 : index
    %122 = vector.load %arg15[%c0_76, %c1_77, %c0_78, %c0_79] : memref<2x2x8x64xf32, #tpu.memory_space<vmem>>, vector<2x1x8x64xf32>
    %123 = vector.shape_cast %122 : vector<2x1x8x64xf32> to vector<2x8x64xf32>
    %124 = vector.shape_cast %121 : vector<2x8x64xf32> to vector<2x1x8x64xf32>
    tpu.vector_store %arg15[%c0_76, %c1_77, %c0_78, %c0_79], %124 {strides = array<i32>} : memref<2x2x8x64xf32, #tpu.memory_space<vmem>>, vector<2x1x8x64xf32>,
    %c0_80 = arith.constant 0 : index
    %c0_81 = arith.constant 0 : index
    %c0_82 = arith.constant 0 : index
    %c0_83 = arith.constant 0 : index
    %125 = vector.load %arg15[%c0_80, %c0_81, %c0_82, %c0_83] : memref<2x2x8x64xf32, #tpu.memory_space<vmem>>, vector<2x2x8x64xf32>
    %126 = vector.shape_cast %125 : vector<2x2x8x64xf32> to vector<4x8x64xf32>
    %127 = arith.addf %126, %56 : vector<4x8x64xf32>
    %cst_84 = arith.constant 0.000000e+00 : f32
    %128 = vector.broadcast %cst_84 : f32 to vector<1x8x64xf32>
    %129 = vector.extract_strided_slice %127 {offsets = [0, 0, 0], sizes = [3, 8, 64], strides = [1, 1, 1]} : vector<4x8x64xf32> to vector<3x8x64xf32>
    %130 = tpu.concatenate %128, %129 in 0 : vector<1x8x64xf32>, vector<3x8x64xf32> -> vector<4x8x64xf32>
    %131 = vector.extract_strided_slice %127 {offsets = [1, 0, 0], sizes = [3, 8, 64], strides = [1, 1, 1]} : vector<4x8x64xf32> to vector<3x8x64xf32>
    %132 = tpu.concatenate %131, %128 in 0 : vector<3x8x64xf32>, vector<1x8x64xf32> -> vector<4x8x64xf32>
    %c0_85 = arith.constant 0 : index
    %c0_86 = arith.constant 0 : index
    %133 = vector.load %arg11[%c0_85, %c0_86] : memref<1x64xf32, #tpu.memory_space<vmem>>, vector<1x64xf32>
    %134 = vector.shape_cast %130 : vector<4x8x64xf32> to vector<32x64xf32>
    %c0_87 = arith.constant 0 : index
    %c0_88 = arith.constant 0 : index
    %c0_89 = arith.constant 0 : index
    %c0_90 = arith.constant 0 : index
    %135 = vector.load %arg10[%c0_87, %c0_88, %c0_89, %c0_90] : memref<2x2x64x64xf32, #tpu.memory_space<vmem>>, vector<1x1x64x64xf32>
    %136 = vector.shape_cast %135 : vector<1x1x64x64xf32> to vector<64x64xf32>
    %cst_91 = arith.constant dense<0.000000e+00> : vector<32x64xf32>
    %137 = tpu.matmul %134, %136, %cst_91 {dimension_numbers = #tpu.dot_dimension_numbers<[1], [0], [0], [1], [0, 0, 1, 1], [], []>} : vector<32x64xf32>, vector<64x64xf32>, vector<32x64xf32> -> vector<32x64xf32>
    %138 = vector.shape_cast %127 : vector<4x8x64xf32> to vector<32x64xf32>
    %c0_92 = arith.constant 0 : index
    %c1_93 = arith.constant 1 : index
    %c0_94 = arith.constant 0 : index
    %c0_95 = arith.constant 0 : index
    %139 = vector.load %arg10[%c0_92, %c1_93, %c0_94, %c0_95] : memref<2x2x64x64xf32, #tpu.memory_space<vmem>>, vector<1x1x64x64xf32>
    %140 = vector.shape_cast %139 : vector<1x1x64x64xf32> to vector<64x64xf32>
    %cst_96 = arith.constant dense<0.000000e+00> : vector<32x64xf32>
    %141 = tpu.matmul %138, %140, %cst_96 {dimension_numbers = #tpu.dot_dimension_numbers<[1], [0], [0], [1], [0, 0, 1, 1], [], []>} : vector<32x64xf32>, vector<64x64xf32>, vector<32x64xf32> -> vector<32x64xf32>
    %142 = arith.addf %137, %141 : vector<32x64xf32>
    %143 = vector.broadcast %133 : vector<1x64xf32> to vector<32x64xf32>
    %144 = arith.addf %142, %143 : vector<32x64xf32>
    %cst_97 = arith.constant 0.000000e+00 : f32
    %145 = vector.broadcast %cst_97 : f32 to vector<32x64xf32>
    %146 = arith.maximumf %144, %145 : vector<32x64xf32>
    %147 = vector.shape_cast %146 : vector<32x64xf32> to vector<4x8x64xf32>
    %c0_98 = arith.constant 0 : index
    %c0_99 = arith.constant 0 : index
    %c0_100 = arith.constant 0 : index
    %c0_101 = arith.constant 0 : index
    %148 = vector.load %arg16[%c0_98, %c0_99, %c0_100, %c0_101] : memref<4x2x8x64xf32, #tpu.memory_space<vmem>>, vector<4x1x8x64xf32>
    %149 = vector.shape_cast %148 : vector<4x1x8x64xf32> to vector<4x8x64xf32>
    %150 = vector.shape_cast %147 : vector<4x8x64xf32> to vector<4x1x8x64xf32>
    tpu.vector_store %arg16[%c0_98, %c0_99, %c0_100, %c0_101], %150 {strides = array<i32>} : memref<4x2x8x64xf32, #tpu.memory_space<vmem>>, vector<4x1x8x64xf32>,
    %151 = vector.shape_cast %127 : vector<4x8x64xf32> to vector<32x64xf32>
    %c1_102 = arith.constant 1 : index
    %c0_103 = arith.constant 0 : index
    %c0_104 = arith.constant 0 : index
    %c0_105 = arith.constant 0 : index
    %152 = vector.load %arg10[%c1_102, %c0_103, %c0_104, %c0_105] : memref<2x2x64x64xf32, #tpu.memory_space<vmem>>, vector<1x1x64x64xf32>
    %153 = vector.shape_cast %152 : vector<1x1x64x64xf32> to vector<64x64xf32>
    %cst_106 = arith.constant dense<0.000000e+00> : vector<32x64xf32>
    %154 = tpu.matmul %151, %153, %cst_106 {dimension_numbers = #tpu.dot_dimension_numbers<[1], [0], [0], [1], [0, 0, 1, 1], [], []>} : vector<32x64xf32>, vector<64x64xf32>, vector<32x64xf32> -> vector<32x64xf32>
    %155 = vector.shape_cast %132 : vector<4x8x64xf32> to vector<32x64xf32>
    %c1_107 = arith.constant 1 : index
    %c1_108 = arith.constant 1 : index
    %c0_109 = arith.constant 0 : index
    %c0_110 = arith.constant 0 : index
    %156 = vector.load %arg10[%c1_107, %c1_108, %c0_109, %c0_110] : memref<2x2x64x64xf32, #tpu.memory_space<vmem>>, vector<1x1x64x64xf32>
    %157 = vector.shape_cast %156 : vector<1x1x64x64xf32> to vector<64x64xf32>
    %cst_111 = arith.constant dense<0.000000e+00> : vector<32x64xf32>
    %158 = tpu.matmul %155, %157, %cst_111 {dimension_numbers = #tpu.dot_dimension_numbers<[1], [0], [0], [1], [0, 0, 1, 1], [], []>} : vector<32x64xf32>, vector<64x64xf32>, vector<32x64xf32> -> vector<32x64xf32>
    %159 = arith.addf %154, %158 : vector<32x64xf32>
    %160 = vector.broadcast %133 : vector<1x64xf32> to vector<32x64xf32>
    %161 = arith.addf %159, %160 : vector<32x64xf32>
    %cst_112 = arith.constant 0.000000e+00 : f32
    %162 = vector.broadcast %cst_112 : f32 to vector<32x64xf32>
    %163 = arith.maximumf %161, %162 : vector<32x64xf32>
    %164 = vector.shape_cast %163 : vector<32x64xf32> to vector<4x8x64xf32>
    %c0_113 = arith.constant 0 : index
    %c1_114 = arith.constant 1 : index
    %c0_115 = arith.constant 0 : index
    %c0_116 = arith.constant 0 : index
    %165 = vector.load %arg16[%c0_113, %c1_114, %c0_115, %c0_116] : memref<4x2x8x64xf32, #tpu.memory_space<vmem>>, vector<4x1x8x64xf32>
    %166 = vector.shape_cast %165 : vector<4x1x8x64xf32> to vector<4x8x64xf32>
    %167 = vector.shape_cast %164 : vector<4x8x64xf32> to vector<4x1x8x64xf32>
    tpu.vector_store %arg16[%c0_113, %c1_114, %c0_115, %c0_116], %167 {strides = array<i32>} : memref<4x2x8x64xf32, #tpu.memory_space<vmem>>, vector<4x1x8x64xf32>,
    %c0_117 = arith.constant 0 : index
    %c0_118 = arith.constant 0 : index
    %c0_119 = arith.constant 0 : index
    %c0_120 = arith.constant 0 : index
    %168 = vector.load %arg16[%c0_117, %c0_118, %c0_119, %c0_120] : memref<4x2x8x64xf32, #tpu.memory_space<vmem>>, vector<4x2x8x64xf32>
    %169 = vector.shape_cast %168 : vector<4x2x8x64xf32> to vector<8x8x64xf32>
    %170 = arith.addf %169, %28 : vector<8x8x64xf32>
    %cst_121 = arith.constant 0.000000e+00 : f32
    %171 = vector.broadcast %cst_121 : f32 to vector<1x8x64xf32>
    %172 = vector.extract_strided_slice %170 {offsets = [0, 0, 0], sizes = [7, 8, 64], strides = [1, 1, 1]} : vector<8x8x64xf32> to vector<7x8x64xf32>
    %173 = tpu.concatenate %171, %172 in 0 : vector<1x8x64xf32>, vector<7x8x64xf32> -> vector<8x8x64xf32>
    %174 = vector.extract_strided_slice %170 {offsets = [1, 0, 0], sizes = [7, 8, 64], strides = [1, 1, 1]} : vector<8x8x64xf32> to vector<7x8x64xf32>
    %175 = tpu.concatenate %174, %171 in 0 : vector<7x8x64xf32>, vector<1x8x64xf32> -> vector<8x8x64xf32>
    %c0_122 = arith.constant 0 : index
    %c0_123 = arith.constant 0 : index
    %176 = vector.load %arg13[%c0_122, %c0_123] : memref<1x32xf32, #tpu.memory_space<vmem>>, vector<1x32xf32>
    %177 = vector.shape_cast %173 : vector<8x8x64xf32> to vector<64x64xf32>
    %c0_124 = arith.constant 0 : index
    %c0_125 = arith.constant 0 : index
    %c0_126 = arith.constant 0 : index
    %c0_127 = arith.constant 0 : index
    %178 = vector.load %arg12[%c0_124, %c0_125, %c0_126, %c0_127] : memref<2x2x64x32xf32, #tpu.memory_space<vmem>>, vector<1x1x64x32xf32>
    %179 = vector.shape_cast %178 : vector<1x1x64x32xf32> to vector<64x32xf32>
    %cst_128 = arith.constant dense<0.000000e+00> : vector<64x32xf32>
    %180 = tpu.matmul %177, %179, %cst_128 {dimension_numbers = #tpu.dot_dimension_numbers<[1], [0], [0], [1], [0, 0, 1, 1], [], []>} : vector<64x64xf32>, vector<64x32xf32>, vector<64x32xf32> -> vector<64x32xf32>
    %181 = vector.shape_cast %170 : vector<8x8x64xf32> to vector<64x64xf32>
    %c0_129 = arith.constant 0 : index
    %c1_130 = arith.constant 1 : index
    %c0_131 = arith.constant 0 : index
    %c0_132 = arith.constant 0 : index
    %182 = vector.load %arg12[%c0_129, %c1_130, %c0_131, %c0_132] : memref<2x2x64x32xf32, #tpu.memory_space<vmem>>, vector<1x1x64x32xf32>
    %183 = vector.shape_cast %182 : vector<1x1x64x32xf32> to vector<64x32xf32>
    %cst_133 = arith.constant dense<0.000000e+00> : vector<64x32xf32>
    %184 = tpu.matmul %181, %183, %cst_133 {dimension_numbers = #tpu.dot_dimension_numbers<[1], [0], [0], [1], [0, 0, 1, 1], [], []>} : vector<64x64xf32>, vector<64x32xf32>, vector<64x32xf32> -> vector<64x32xf32>
    %185 = arith.addf %180, %184 : vector<64x32xf32>
    %186 = vector.broadcast %176 : vector<1x32xf32> to vector<64x32xf32>
    %187 = arith.addf %185, %186 : vector<64x32xf32>
    %188 = vector.shape_cast %187 : vector<64x32xf32> to vector<8x8x32xf32>
    %c0_134 = arith.constant 0 : index
    %c0_135 = arith.constant 0 : index
    %c0_136 = arith.constant 0 : index
    %c0_137 = arith.constant 0 : index
    %189 = vector.load %arg14[%c0_134, %c0_135, %c0_136, %c0_137] : memref<8x2x8x32xf32, #tpu.memory_space<vmem>>, vector<8x1x8x32xf32>
    %190 = vector.shape_cast %189 : vector<8x1x8x32xf32> to vector<8x8x32xf32>
    %191 = vector.shape_cast %188 : vector<8x8x32xf32> to vector<8x1x8x32xf32>
    tpu.vector_store %arg14[%c0_134, %c0_135, %c0_136, %c0_137], %191 {strides = array<i32>} : memref<8x2x8x32xf32, #tpu.memory_space<vmem>>, vector<8x1x8x32xf32>,
    %192 = vector.shape_cast %170 : vector<8x8x64xf32> to vector<64x64xf32>
    %c1_138 = arith.constant 1 : index
    %c0_139 = arith.constant 0 : index
    %c0_140 = arith.constant 0 : index
    %c0_141 = arith.constant 0 : index
    %193 = vector.load %arg12[%c1_138, %c0_139, %c0_140, %c0_141] : memref<2x2x64x32xf32, #tpu.memory_space<vmem>>, vector<1x1x64x32xf32>
    %194 = vector.shape_cast %193 : vector<1x1x64x32xf32> to vector<64x32xf32>
    %cst_142 = arith.constant dense<0.000000e+00> : vector<64x32xf32>
    %195 = tpu.matmul %192, %194, %cst_142 {dimension_numbers = #tpu.dot_dimension_numbers<[1], [0], [0], [1], [0, 0, 1, 1], [], []>} : vector<64x64xf32>, vector<64x32xf32>, vector<64x32xf32> -> vector<64x32xf32>
    %196 = vector.shape_cast %175 : vector<8x8x64xf32> to vector<64x64xf32>
    %c1_143 = arith.constant 1 : index
    %c1_144 = arith.constant 1 : index
    %c0_145 = arith.constant 0 : index
    %c0_146 = arith.constant 0 : index
    %197 = vector.load %arg12[%c1_143, %c1_144, %c0_145, %c0_146] : memref<2x2x64x32xf32, #tpu.memory_space<vmem>>, vector<1x1x64x32xf32>
    %198 = vector.shape_cast %197 : vector<1x1x64x32xf32> to vector<64x32xf32>
    %cst_147 = arith.constant dense<0.000000e+00> : vector<64x32xf32>
    %199 = tpu.matmul %196, %198, %cst_147 {dimension_numbers = #tpu.dot_dimension_numbers<[1], [0], [0], [1], [0, 0, 1, 1], [], []>} : vector<64x64xf32>, vector<64x32xf32>, vector<64x32xf32> -> vector<64x32xf32>
    %200 = arith.addf %195, %199 : vector<64x32xf32>
    %201 = vector.broadcast %176 : vector<1x32xf32> to vector<64x32xf32>
    %202 = arith.addf %200, %201 : vector<64x32xf32>
    %203 = vector.shape_cast %202 : vector<64x32xf32> to vector<8x8x32xf32>
    %c0_148 = arith.constant 0 : index
    %c1_149 = arith.constant 1 : index
    %c0_150 = arith.constant 0 : index
    %c0_151 = arith.constant 0 : index
    %204 = vector.load %arg14[%c0_148, %c1_149, %c0_150, %c0_151] : memref<8x2x8x32xf32, #tpu.memory_space<vmem>>, vector<8x1x8x32xf32>
    %205 = vector.shape_cast %204 : vector<8x1x8x32xf32> to vector<8x8x32xf32>
    %206 = vector.shape_cast %203 : vector<8x8x32xf32> to vector<8x1x8x32xf32>
    tpu.vector_store %arg14[%c0_148, %c1_149, %c0_150, %c0_151], %206 {strides = array<i32>} : memref<8x2x8x32xf32, #tpu.memory_space<vmem>>, vector<8x1x8x32xf32>,
    return
  }
  func.func @transform_0(%arg0: i32) -> (i32, i32, i32) {
    %c0_i32 = arith.constant 0 : i32
    %c0_i32_0 = arith.constant 0 : i32
    %c0_i32_1 = arith.constant 0 : i32
    return %c0_i32, %arg0, %c0_i32_0 : i32, i32, i32
  }
  func.func @transform_1(%arg0: i32) -> (i32, i32, i32) {
    %c0_i32 = arith.constant 0 : i32
    %c0_i32_0 = arith.constant 0 : i32
    %c0_i32_1 = arith.constant 0 : i32
    %c0_i32_2 = arith.constant 0 : i32
    return %c0_i32, %c0_i32_0, %c0_i32_1 : i32, i32, i32
  }
  func.func @transform_2(%arg0: i32) -> (i32, i32) {
    %c0_i32 = arith.constant 0 : i32
    %c0_i32_0 = arith.constant 0 : i32
    %c0_i32_1 = arith.constant 0 : i32
    return %c0_i32, %c0_i32_0 : i32, i32
  }
  func.func @transform_3(%arg0: i32) -> (i32, i32, i32) {
    %c0_i32 = arith.constant 0 : i32
    %c0_i32_0 = arith.constant 0 : i32
    %c0_i32_1 = arith.constant 0 : i32
    %c0_i32_2 = arith.constant 0 : i32
    return %c0_i32, %c0_i32_0, %c0_i32_1 : i32, i32, i32
  }
  func.func @transform_4(%arg0: i32) -> (i32, i32) {
    %c0_i32 = arith.constant 0 : i32
    %c0_i32_0 = arith.constant 0 : i32
    %c0_i32_1 = arith.constant 0 : i32
    return %c0_i32, %c0_i32_0 : i32, i32
  }
  func.func @transform_5(%arg0: i32) -> (i32, i32, i32) {
    %c0_i32 = arith.constant 0 : i32
    %c0_i32_0 = arith.constant 0 : i32
    %c0_i32_1 = arith.constant 0 : i32
    %c0_i32_2 = arith.constant 0 : i32
    return %c0_i32, %c0_i32_0, %c0_i32_1 : i32, i32, i32
  }
  func.func @transform_6(%arg0: i32) -> (i32, i32) {
    %c0_i32 = arith.constant 0 : i32
    %c0_i32_0 = arith.constant 0 : i32
    %c0_i32_1 = arith.constant 0 : i32
    return %c0_i32, %c0_i32_0 : i32, i32
  }
  func.func @transform_7(%arg0: i32) -> (i32, i32, i32, i32) {
    %c0_i32 = arith.constant 0 : i32
    %c0_i32_0 = arith.constant 0 : i32
    %c0_i32_1 = arith.constant 0 : i32
    %c0_i32_2 = arith.constant 0 : i32
    %c0_i32_3 = arith.constant 0 : i32
    return %c0_i32, %c0_i32_0, %c0_i32_1, %c0_i32_2 : i32, i32, i32, i32
  }
  func.func @transform_8(%arg0: i32) -> (i32, i32) {
    %c0_i32 = arith.constant 0 : i32
    %c0_i32_0 = arith.constant 0 : i32
    %c0_i32_1 = arith.constant 0 : i32
    return %c0_i32, %c0_i32_0 : i32, i32
  }
  func.func @transform_9(%arg0: i32) -> (i32, i32, i32, i32) {
    %c0_i32 = arith.constant 0 : i32
    %c0_i32_0 = arith.constant 0 : i32
    %c0_i32_1 = arith.constant 0 : i32
    %c0_i32_2 = arith.constant 0 : i32
    %c0_i32_3 = arith.constant 0 : i32
    return %c0_i32, %c0_i32_0, %c0_i32_1, %c0_i32_2 : i32, i32, i32, i32
  }
  func.func @transform_10(%arg0: i32) -> (i32, i32) {
    %c0_i32 = arith.constant 0 : i32
    %c0_i32_0 = arith.constant 0 : i32
    %c0_i32_1 = arith.constant 0 : i32
    return %c0_i32, %c0_i32_0 : i32, i32
  }
  func.func @transform_11(%arg0: i32) -> (i32, i32, i32, i32) {
    %c0_i32 = arith.constant 0 : i32
    %c0_i32_0 = arith.constant 0 : i32
    %c0_i32_1 = arith.constant 0 : i32
    %c0_i32_2 = arith.constant 0 : i32
    %c0_i32_3 = arith.constant 0 : i32
    return %c0_i32, %c0_i32_0, %c0_i32_1, %c0_i32_2 : i32, i32, i32, i32
  }
  func.func @transform_12(%arg0: i32) -> (i32, i32) {
    %c0_i32 = arith.constant 0 : i32
    %c0_i32_0 = arith.constant 0 : i32
    %c0_i32_1 = arith.constant 0 : i32
    return %c0_i32, %c0_i32_0 : i32, i32
  }
  func.func @transform_13(%arg0: i32) -> (i32, i32, i32, i32) {
    %c0_i32 = arith.constant 0 : i32
    %c0_i32_0 = arith.constant 0 : i32
    %c0_i32_1 = arith.constant 0 : i32
    %c0_i32_2 = arith.constant 0 : i32
    return %c0_i32, %c0_i32_0, %arg0, %c0_i32_1 : i32, i32, i32, i32
  }
}

</mosaic_0001>

<bundles_post_ra>
// kernel: tile.33
= control target key start
LH: loop header
LB: loop body
LE: loop exit
PB: predicated region body
PF: predicated region fallthrough
CT: control target
= control target key end

     0   :  { %s22_s0 = inlined_call_operand.vmem [shape: f32[8], index: 0, kind: input, shape index: {}]   ;;  %s23_s1 = inlined_call_operand.vmem [shape: f32[8,8], index: 1, kind: output, shape index: {}]  }
   0x1   :  { %v4_v0 = vld [vmem:[%s22_s0] ss:$0 sm:$0xff] }
   0x2   :  { %5 = vst [vmem:[%s23_s1] sm:$0xff] %v4_v0 }

// kernel: tile.34
= control target key start
LH: loop header
LB: loop body
LE: loop exit
PB: predicated region body
PF: predicated region fallthrough
CT: control target
= control target key end

     0   :  { %s67_s10 = smov 56   ;;  %s68_s11 = smov 40   ;;  %vm3_vm0 = vcmask 64512   ;;  %vm9_vm1 = vcmask 523712   ;;  %vm15_vm2 = vcmask 458112   ;;  %vm21_vm3 = vcmask 392512   ;;  %s111_s0 = inlined_call_operand.vmem [shape: f32[8,8], index: 0, kind: input, shape index: {}]   ;;  %s112_s1 = inlined_call_operand.vmem [shape: f32[1,64], index: 1, kind: output, shape index: {}]  }
   0x1   :  { %v53_v0 = vld [vmem:[%s111_s0 + $0x7] sm:$0x1]   ;;  %v55_v1 = vld [vmem:[%s111_s0 + $0x5] sm:$0x1]   ;;  %v54_v2 = vld [vmem:[%s111_s0 + $0x6] sm:$0x1]  }
   0x2   :  { %7 = vrot.lane.b32.xlu0 %v53_v0, %s67_s10  ;;  %19 = vrot.lane.b32.xlu1 %v55_v1, %s68_s11  ;;  %v56_v3 = vld [vmem:[%s111_s0 + $0x4] sm:$0x1]   ;;  %v2_v4 = vld [vmem:[%s111_s0] sm:$0x1]   ;;  %s69_s18 = smov 48   ;;  %s70_s19 = smov 32  }
   0x3   :  { %4 = vst.msk [vmem:[#allocation0] sm:$0x1] %vm3_vm0, %v2_v4   ;;  %v57_v5 = vld [vmem:[%s111_s0 + $0x3] sm:$0x1]   ;;  %v58_v6 = vld [vmem:[%s111_s0 + $0x2] sm:$0x1]  }
   0x4   :  { %s71_s24 = smov 24   ;;  %s72_s25 = smov 16   ;;  %v59_v7 = vld [vmem:[%s111_s0 + $0x1] sm:$0x1]   ;;  %vm27_vm4 = vcmask 326912   ;;  %vm33_vm5 = vcmask 261312  }
   0x5   :  { %s73_s0 = smov 8   ;;  %vm39_vm6 = vcmask 195712   ;;  %vm45_vm7 = vcmask 130112  }
   0x6   :  { %13 = vrot.lane.b32.xlu0 %v54_v2, %s69_s18  ;;  %25 = vrot.lane.b32.xlu1 %v56_v3, %s70_s19 }
   0xa   :  { %31 = vrot.lane.b32.xlu0 %v57_v5, %s71_s24  ;;  %37 = vrot.lane.b32.xlu1 %v58_v6, %s72_s25 }
   0xe   :  { %43 = vrot.lane.b32.xlu0 %v59_v7, %s73_s0 }
  0x74   :  { %v8_v8 = vpop.permute.xlu0 %7   ;;  %v20_v9 = vpop.permute.xlu1 %19  }
  0x75   :  { %10 = vst.msk [vmem:[#allocation0] sm:$0x1] %vm9_vm1, %v8_v8  }
  0x78   :  { %v14_v10 = vpop.permute.xlu0 %13   ;;  %v26_v11 = vpop.permute.xlu1 %25  }
  0x79   :  { %16 = vst.msk [vmem:[#allocation0] sm:$0x1] %vm15_vm2, %v14_v10  }
  0x7a   :  { %22 = vst.msk [vmem:[#allocation0] sm:$0x1] %vm21_vm3, %v20_v9  }
  0x7b   :  { %28 = vst.msk [vmem:[#allocation0] sm:$0x1] %vm27_vm4, %v26_v11  }
  0x7c   :  { %v32_v12 = vpop.permute.xlu0 %31   ;;  %v38_v13 = vpop.permute.xlu1 %37  }
  0x7d   :  { %34 = vst.msk [vmem:[#allocation0] sm:$0x1] %vm33_vm5, %v32_v12  }
  0x7e   :  { %40 = vst.msk [vmem:[#allocation0] sm:$0x1] %vm39_vm6, %v38_v13  }
  0x80   :  { %v44_v14 = vpop.permute.xlu0 %43  }
  0x81   :  { %46 = vst.msk [vmem:[#allocation0] sm:$0x1] %vm45_vm7, %v44_v14  }
  0x88   :  { %v50_v15 = vld [vmem:[#allocation0] sm:$0x1] }
  0x89   :  { %52 = vst [vmem:[%s112_s1] sm:$0x1] %v50_v15 }

// kernel: tile.38
= control target key start
LH: loop header
LB: loop body
LE: loop exit
PB: predicated region body
PF: predicated region fallthrough
CT: control target
= control target key end

     0   :  { %s22_s0 = inlined_call_operand.vmem [shape: f32[16], index: 0, kind: input, shape index: {}]   ;;  %s23_s1 = inlined_call_operand.vmem [shape: f32[4,16], index: 1, kind: output, shape index: {}]  }
   0x1   :  { %v4_v0 = vld [vmem:[%s22_s0] ss:$0 sm:$0xff] }
   0x2   :  { %5 = vst [vmem:[%s23_s1] sm:$0xf] %v4_v0 }

// kernel: tile.39
= control target key start
LH: loop header
LB: loop body
LE: loop exit
PB: predicated region body
PF: predicated region fallthrough
CT: control target
= control target key end

     0   :  { %vm7_vm0 = vcmask 130048   ;;  %s37_s8 = smov 16   ;;  %s38_s9 = smov 32   ;;  %vm13_vm1 = vcmask 523648   ;;  %vm19_vm2 = vcmask 392448   ;;  %vm25_vm3 = vcmask 261248   ;;  %s55_s0 = inlined_call_operand.vmem [shape: f32[4,16], index: 0, kind: input, shape index: {}]   ;;  %s56_s1 = inlined_call_operand.vmem [shape: f32[1,64], index: 1, kind: output, shape index: {}]  }
   0x1   :  { %v4_v0 = vld [vmem:[%s55_s0] sm:$0xf]  ;;  %s36_s0 = smov 48  }
   0x2   :  { %5 = vst [vmem:[#allocation1] sm:$0xf] %v4_v0 }
   0x9   :  { %v10_v1 = vld [vmem:[#allocation1 + $0x3] sm:$0x1]   ;;  %v22_v2 = vld [vmem:[#allocation1 + $0x1] sm:$0x1]   ;;  %v6_v3 = vld [vmem:[#allocation1] sm:$0x1]  }
   0xa   :  { %11 = vrot.lane.b32.xlu0 %v10_v1, %s36_s0  ;;  %23 = vrot.lane.b32.xlu1 %v22_v2, %s37_s8  ;;  %v16_v4 = vld [vmem:[#allocation1 + $0x2] sm:$0x1]   ;;  %8 = vst.msk [vmem:[#allocation0] sm:$0x1] %vm7_vm0, %v6_v3  }
   0xe   :  { %17 = vrot.lane.b32.xlu0 %v16_v4, %s38_s9 }
  0x7c   :  { %v12_v5 = vpop.permute.xlu0 %11   ;;  %v24_v6 = vpop.permute.xlu1 %23  }
  0x7d   :  { %14 = vst.msk [vmem:[#allocation0] sm:$0x1] %vm13_vm1, %v12_v5  }
  0x80   :  { %v18_v7 = vpop.permute.xlu0 %17  }
  0x81   :  { %20 = vst.msk [vmem:[#allocation0] sm:$0x1] %vm19_vm2, %v18_v7  }
  0x82   :  { %26 = vst.msk [vmem:[#allocation0] sm:$0x1] %vm25_vm3, %v24_v6  }
  0x89   :  { %v30_v8 = vld [vmem:[#allocation0] sm:$0x1] }
  0x8a   :  { %32 = vst [vmem:[%s56_s1] sm:$0x1] %v30_v8 }

// kernel: tile.43
= control target key start
LH: loop header
LB: loop body
LE: loop exit
PB: predicated region body
PF: predicated region fallthrough
CT: control target
= control target key end

     0   :  { %s22_s0 = inlined_call_operand.vmem [shape: f32[32], index: 0, kind: input, shape index: {}]   ;;  %s23_s1 = inlined_call_operand.vmem [shape: f32[2,32], index: 1, kind: output, shape index: {}]  }
   0x1   :  { %v4_v0 = vld [vmem:[%s22_s0] ss:$0 sm:$0xff] }
   0x2   :  { %5 = vst [vmem:[%s23_s1] sm:$0x3] %v4_v0 }

// kernel: tile.44
= control target key start
LH: loop header
LB: loop body
LE: loop exit
PB: predicated region body
PF: predicated region fallthrough
CT: control target
= control target key end

     0   :  { %vm7_vm0 = vcmask 261120   ;;  %vm13_vm1 = vcmask 523520   ;;  %s39_s0 = inlined_call_operand.vmem [shape: f32[2,32], index: 0, kind: input, shape index: {}]   ;;  %s40_s1 = inlined_call_operand.vmem [shape: f32[1,64], index: 1, kind: output, shape index: {}]  }
   0x1   :  { %v4_v0 = vld [vmem:[%s39_s0] sm:$0x3]  ;;  %s22_s0 = smov 32  }
   0x2   :  { %5 = vst [vmem:[#allocation1] sm:$0x3] %v4_v0 }
   0x9   :  { %v10_v1 = vld [vmem:[#allocation1 + $0x1] sm:$0x1]   ;;  %v6_v2 = vld [vmem:[#allocation1] sm:$0x1]  }
   0xa   :  { %11 = vrot.lane.b32.xlu0 %v10_v1, %s22_s0  ;;  %8 = vst.msk [vmem:[#allocation0] sm:$0x1] %vm7_vm0, %v6_v2  }
  0x7c   :  { %v12_v3 = vpop.permute.xlu0 %11  }
  0x7d   :  { %14 = vst.msk [vmem:[#allocation0] sm:$0x1] %vm13_vm1, %v12_v3  }
  0x84   :  { %v18_v4 = vld [vmem:[#allocation0] sm:$0x1] }
  0x85   :  { %20 = vst [vmem:[%s40_s1] sm:$0x1] %v18_v4 }

// kernel: tile.58
= control target key start
LH: loop header
LB: loop body
LE: loop exit
PB: predicated region body
PF: predicated region fallthrough
CT: control target
= control target key end

     0   :  { %s28_s0 = inlined_call_operand.vmem [shape: f32[2], index: 0, kind: input, shape index: {}]   ;;  %s29_s1 = inlined_call_operand.vmem [shape: f32[16,2], index: 1, kind: output, shape index: {}]  }
   0x1   :  { %v4_v0 = vld [vmem:[%s28_s0] ss:$0 sm:$0xff] }
   0x2   :  { %5 = vst [vmem:[%s29_s1] sm:$0xff] %v4_v0  ;;  %8 = vst [vmem:[%s29_s1 + $0x8] sm:$0xff] %v4_v0 }

// kernel: tile.59
= control target key start
LH: loop header
LB: loop body
LE: loop exit
PB: predicated region body
PF: predicated region fallthrough
CT: control target
= control target key end

     0   :  { %s131_s10 = smov 30   ;;  %s132_s11 = smov 26   ;;  %vm3_vm0 = vcmask 15360   ;;  %vm9_vm1 = vcmask 261360   ;;  %vm15_vm2 = vcmask 244960   ;;  %vm21_vm3 = vcmask 228560   ;;  %s207_s0 = inlined_call_operand.vmem [shape: f32[16,2], index: 0, kind: input, shape index: {}]   ;;  %s208_s1 = inlined_call_operand.vmem [shape: f32[1,32], index: 1, kind: output, shape index: {}]  }
   0x1   :  { %v101_v0 = vld [vmem:[%s207_s0 + $0xf] sm:$0x1]   ;;  %v103_v1 = vld [vmem:[%s207_s0 + $0xd] sm:$0x1]   ;;  %v102_v2 = vld [vmem:[%s207_s0 + $0xe] sm:$0x1]  }
   0x2   :  { %7 = vrot.lane.b32.xlu0 %v101_v0, %s131_s10  ;;  %19 = vrot.lane.b32.xlu1 %v103_v1, %s132_s11  ;;  %v104_v3 = vld [vmem:[%s207_s0 + $0xc] sm:$0x1]   ;;  %s133_s16 = smov 28   ;;  %s134_s17 = smov 24   ;;  %v105_v4 = vld [vmem:[%s207_s0 + $0xb] sm:$0x1]  }
   0x3   :  { %v106_v5 = vld [vmem:[%s207_s0 + $0xa] sm:$0x1]   ;;  %v2_v6 = vld [vmem:[%s207_s0] sm:$0x1]   ;;  %s135_s24 = smov 22   ;;  %s136_s25 = smov 20  }
   0x4   :  { %4 = vst.msk [vmem:[#allocation0] sm:$0x1] %vm3_vm0, %v2_v6   ;;  %v107_v7 = vld [vmem:[%s207_s0 + $0x9] sm:$0x1]   ;;  %v108_v8 = vld [vmem:[%s207_s0 + $0x8] sm:$0x1]  }
   0x5   :  { %s137_s30 = smov 18   ;;  %s138_s2 = smov 16   ;;  %v109_v9 = vld [vmem:[%s207_s0 + $0x7] sm:$0x1]   ;;  %v110_v10 = vld [vmem:[%s207_s0 + $0x6] sm:$0x1]  }
   0x6   :  { %13 = vrot.lane.b32.xlu0 %v102_v2, %s133_s16  ;;  %25 = vrot.lane.b32.xlu1 %v104_v3, %s134_s17  ;;  %s139_s7 = smov 14   ;;  %s140_s8 = smov 12   ;;  %v111_v11 = vld [vmem:[%s207_s0 + $0x5] sm:$0x1]   ;;  %v112_v12 = vld [vmem:[%s207_s0 + $0x4] sm:$0x1]  }
   0x7   :  { %s141_s13 = smov 10   ;;  %s142_s14 = smov 8   ;;  %v113_v13 = vld [vmem:[%s207_s0 + $0x3] sm:$0x1]   ;;  %v114_v14 = vld [vmem:[%s207_s0 + $0x2] sm:$0x1]  }
   0x8   :  { %s143_s19 = smov 6   ;;  %s144_s20 = smov 4   ;;  %v115_v15 = vld [vmem:[%s207_s0 + $0x1] sm:$0x1]   ;;  %vm27_vm4 = vcmask 212160   ;;  %vm33_vm5 = vcmask 195760  }
   0x9   :  { %s145_s0 = smov 2   ;;  %vm39_vm6 = vcmask 179360   ;;  %vm45_vm7 = vcmask 162960   ;;  %vm51_vm8 = vcmask 146560   ;;  %vm57_vm9 = vcmask 130160  }
   0xa   :  { %31 = vrot.lane.b32.xlu0 %v105_v4, %s135_s24  ;;  %37 = vrot.lane.b32.xlu1 %v106_v5, %s136_s25  ;;  %vm63_vm10 = vcmask 113760   ;;  %vm69_vm11 = vcmask 97360   ;;  %vm75_vm12 = vcmask 80960   ;;  %vm81_vm13 = vcmask 64560  }
   0xb   :  { %vm87_vm14 = vcmask 48160   ;;  %vm93_vm15 = vcmask 31760  }
   0xe   :  { %43 = vrot.lane.b32.xlu0 %v107_v7, %s137_s30  ;;  %49 = vrot.lane.b32.xlu1 %v108_v8, %s138_s2 }
  0x12   :  { %55 = vrot.lane.b32.xlu0 %v109_v9, %s139_s7  ;;  %61 = vrot.lane.b32.xlu1 %v110_v10, %s140_s8 }
  0x16   :  { %67 = vrot.lane.b32.xlu0 %v111_v11, %s141_s13  ;;  %73 = vrot.lane.b32.xlu1 %v112_v12, %s142_s14 }
  0x1a   :  { %79 = vrot.lane.b32.xlu0 %v113_v13, %s143_s19  ;;  %85 = vrot.lane.b32.xlu1 %v114_v14, %s144_s20 }
  0x1e   :  { %91 = vrot.lane.b32.xlu0 %v115_v15, %s145_s0 }
  0x74   :  { %v8_v16 = vpop.permute.xlu0 %7   ;;  %v20_v17 = vpop.permute.xlu1 %19  }
  0x75   :  { %10 = vst.msk [vmem:[#allocation0] sm:$0x1] %vm9_vm1, %v8_v16  }
  0x78   :  { %v14_v18 = vpop.permute.xlu0 %13   ;;  %v26_v19 = vpop.permute.xlu1 %25  }
  0x79   :  { %16 = vst.msk [vmem:[#allocation0] sm:$0x1] %vm15_vm2, %v14_v18  }
  0x7a   :  { %22 = vst.msk [vmem:[#allocation0] sm:$0x1] %vm21_vm3, %v20_v17  }
  0x7b   :  { %28 = vst.msk [vmem:[#allocation0] sm:$0x1] %vm27_vm4, %v26_v19  }
  0x7c   :  { %v32_v20 = vpop.permute.xlu0 %31   ;;  %v38_v21 = vpop.permute.xlu1 %37  }
  0x7d   :  { %34 = vst.msk [vmem:[#allocation0] sm:$0x1] %vm33_vm5, %v32_v20  }
  0x7e   :  { %40 = vst.msk [vmem:[#allocation0] sm:$0x1] %vm39_vm6, %v38_v21  }
  0x80   :  { %v44_v22 = vpop.permute.xlu0 %43   ;;  %v50_v23 = vpop.permute.xlu1 %49  }
  0x81   :  { %46 = vst.msk [vmem:[#allocation0] sm:$0x1] %vm45_vm7, %v44_v22  }
  0x82   :  { %52 = vst.msk [vmem:[#allocation0] sm:$0x1] %vm51_vm8, %v50_v23  }
  0x84   :  { %v56_v24 = vpop.permute.xlu0 %55   ;;  %v62_v25 = vpop.permute.xlu1 %61  }
  0x85   :  { %58 = vst.msk [vmem:[#allocation0] sm:$0x1] %vm57_vm9, %v56_v24  }
  0x86   :  { %64 = vst.msk [vmem:[#allocation0] sm:$0x1] %vm63_vm10, %v62_v25  }
  0x88   :  { %v68_v26 = vpop.permute.xlu0 %67   ;;  %v74_v27 = vpop.permute.xlu1 %73  }
  0x89   :  { %70 = vst.msk [vmem:[#allocation0] sm:$0x1] %vm69_vm11, %v68_v26  }
  0x8a   :  { %76 = vst.msk [vmem:[#allocation0] sm:$0x1] %vm75_vm12, %v74_v27  }
  0x8c   :  { %v80_v28 = vpop.permute.xlu0 %79   ;;  %v86_v29 = vpop.permute.xlu1 %85  }
  0x8d   :  { %82 = vst.msk [vmem:[#allocation0] sm:$0x1] %vm81_vm13, %v80_v28  }
  0x8e   :  { %88 = vst.msk [vmem:[#allocation0] sm:$0x1] %vm87_vm14, %v86_v29  }
  0x90   :  { %v92_v30 = vpop.permute.xlu0 %91  }
  0x91   :  { %94 = vst.msk [vmem:[#allocation0] sm:$0x1] %vm93_vm15, %v92_v30  }
  0x98   :  { %v98_v31 = vld [vmem:[#allocation0] sm:$0x1] }
  0x99   :  { %100 = vst [vmem:[%s208_s1] sm:$0x1] %v98_v31 }

// kernel: ccnn2_forward.1
= control target key start
LH: loop header
LB: loop body
LE: loop exit
PB: predicated region body
PF: predicated region fallthrough
CT: control target
= control target key end

     0   :  { %s4477_s25 = smov 0   ;;  %s4479_s26 = smov 0   ;;  %s5338_s0 = inlined_call_operand.vmem [shape: f32[16,16,32], index: 0, kind: input, shape index: {}]   ;;  %s5339_s1 = inlined_call_operand.vmem [shape: f32[3,32,64], index: 1, kind: input, shape index: {}]   ;;  %s5340_s2 = inlined_call_operand.vmem [shape: f32[1,64], index: 2, kind: input, shape index: {}]   ;;  %s5341_s3 = inlined_call_operand.vmem [shape: f32[3,64,64], index: 3, kind: input, shape index: {}]   ;;  %s5342_s4 = inlined_call_operand.vmem [shape: f32[1,64], index: 4, kind: input, shape index: {}]   ;;  %s5343_s5 = inlined_call_operand.vmem [shape: f32[3,64,64], index: 5, kind: input, shape index: {}]   ;;  %s5344_s6 = inlined_call_operand.vmem [shape: f32[1,64], index: 6, kind: input, shape index: {}]   ;;  %s5345_s7 = inlined_call_operand.vmem [shape: f32[2,2,64,64], index: 7, kind: input, shape index: {}]   ;;  %s5346_s8 = inlined_call_operand.vmem [shape: f32[1,64], index: 8, kind: input, shape index: {}]   ;;  %s5347_s9 = inlined_call_operand.vmem [shape: f32[2,2,64,64], index: 9, kind: input, shape index: {}]   ;;  %s5348_s10 = inlined_call_operand.vmem [shape: f32[1,64], index: 10, kind: input, shape index: {}]   ;;  %s5349_s11 = inlined_call_operand.vmem [shape: f32[2,2,64,32], index: 11, kind: input, shape index: {}]   ;;  %s5350_s12 = inlined_call_operand.vmem [shape: f32[1,32], index: 12, kind: input, shape index: {}]   ;;  %s5351_s13 = inlined_call_operand.vmem [shape: f32[8,2,16,32], index: 13, kind: output, shape index: {}]  }
   0x1   :  { %s4481_s27 = smov 0  }
   0x2 LB: > { %s5352_s28 = sadd.s32 4294967295, %s4404_s27   ;;  %s4494_s29 = sadd.s32 1, %s4404_s27   ;;  %s4404_s27 = sphi %s4481_s27, %s5357_s27   ;;  %s4400_s26 = sphi %s4479_s26, %s5356_s26   ;;  %s4396_s25 = sphi %s4477_s25, %s5355_s25  }
   0x3   : > { %s27_s30 = ssub.s32 %s4404_s27, %s4494_s29  ;;  %s30_s14 = sadd.s32 1, %s4400_s26 }
   0x4   : > { %p28_p0 = scmp.eq.s32.totalorder %s27_s30, 0  ;;  %p37_p1 = scmp.ne.s32.totalorder %s4400_s26, %s4396_s25 }
   0x5   : > { %p38_p2 = scmp.eq.s32.totalorder %s4404_s27, 0  ;;  %p319_p3 = scmp.eq.s32.totalorder %s5352_s28, 1 }
   0x6   : > { %s4505_s15 = scalar_select %p28_p0, %s4400_s26, %s30_s14  }
   0x7   : > { %p39_p4 = por %p38_p2, %p37_p1  ;;  %p4507_p5 = por %p319_p3, %p37_p1 }
   0x8   : > { %p3043_p6 = scmp.ge.s32.totalorder %s4404_s27, 2 }
   0xa   : > { %377 = sbr.rel (%p3043_p6) target bundleno = 29 (0x1d), region = 64 }
  0x11   : > { %380 = sbr.rel (!%p39_p4) target bundleno = 29 (0x1d), region = 68  ;;  %s382_s17 = sand.u32 (%p39_p4), 1, %s4400_s26  }
  0x12   : > { %s3045_s18 = sshll.u32 (%p39_p4), %s4404_s27, 3  ;;  %s3044_s19 = sshll.u32 (%p39_p4), %s382_s17, 7 }
  0x13   : > { %s4517_s22 = scalar_lea.vmem (%p39_p4), %s5338_s0, %s3045_s18  ;;  %s384_s23 = scalar_lea.vmem (%p39_p4), [#allocation4], %s3044_s19 }
  0x14   : > { %v444_v0 = vld [vmem:[%s4517_s22] sm:$0xff] (%p39_p4)  ;;  %v446_v1 = vld [vmem:[%s4517_s22 + $0x10] sm:$0xff] (%p39_p4) }
  0x15   : > { %v448_v2 = vld [vmem:[%s4517_s22 + $0x20] sm:$0xff] (%p39_p4)  ;;  %445 = vst [vmem:[%s384_s23] sm:$0xff] (%p39_p4), %v444_v0  ;;  %447 = vst [vmem:[%s384_s23 + $0x8] sm:$0xff] (%p39_p4), %v446_v1  ;;  %v450_v3 = vld [vmem:[%s4517_s22 + $0x30] sm:$0xff] (%p39_p4) }
  0x16   : > { %449 = vst [vmem:[%s384_s23 + $0x10] sm:$0xff] (%p39_p4), %v448_v2  ;;  %v452_v4 = vld [vmem:[%s4517_s22 + $0x40] sm:$0xff] (%p39_p4)  ;;  %v454_v5 = vld [vmem:[%s4517_s22 + $0x50] sm:$0xff] (%p39_p4)  ;;  %451 = vst [vmem:[%s384_s23 + $0x18] sm:$0xff] (%p39_p4), %v450_v3 }
  0x17   : > { %453 = vst [vmem:[%s384_s23 + $0x20] sm:$0xff] (%p39_p4), %v452_v4  ;;  %455 = vst [vmem:[%s384_s23 + $0x28] sm:$0xff] (%p39_p4), %v454_v5  ;;  %v456_v6 = vld [vmem:[%s4517_s22 + $0x60] sm:$0xff] (%p39_p4)  ;;  %v458_v7 = vld [vmem:[%s4517_s22 + $0x70] sm:$0xff] (%p39_p4) }
  0x18   : > { %v460_v8 = vld [vmem:[%s4517_s22 + $0x80] sm:$0xff]  ;;  %457 = vst [vmem:[%s384_s23 + $0x30] sm:$0xff] %v456_v6  ;;  %459 = vst [vmem:[%s384_s23 + $0x38] sm:$0xff] %v458_v7  ;;  %v462_v9 = vld [vmem:[%s4517_s22 + $0x90] sm:$0xff] }
  0x19   : > { %461 = vst [vmem:[%s384_s23 + $0x40] sm:$0xff] %v460_v8  ;;  %v464_v10 = vld [vmem:[%s4517_s22 + $0xa0] sm:$0xff]  ;;  %v466_v11 = vld [vmem:[%s4517_s22 + $0xb0] sm:$0xff]  ;;  %463 = vst [vmem:[%s384_s23 + $0x48] sm:$0xff] %v462_v9 }
  0x1a   : > { %465 = vst [vmem:[%s384_s23 + $0x50] sm:$0xff] %v464_v10  ;;  %467 = vst [vmem:[%s384_s23 + $0x58] sm:$0xff] %v466_v11  ;;  %v468_v12 = vld [vmem:[%s4517_s22 + $0xc0] sm:$0xff]  ;;  %v470_v13 = vld [vmem:[%s4517_s22 + $0xd0] sm:$0xff] }
  0x1b   : > { %v472_v14 = vld [vmem:[%s4517_s22 + $0xe0] sm:$0xff]  ;;  %469 = vst [vmem:[%s384_s23 + $0x60] sm:$0xff] %v468_v12  ;;  %471 = vst [vmem:[%s384_s23 + $0x68] sm:$0xff] %v470_v13  ;;  %v474_v15 = vld [vmem:[%s4517_s22 + $0xf0] sm:$0xff] }
  0x1c   : > { %473 = vst [vmem:[%s384_s23 + $0x70] sm:$0xff] %v472_v14  ;;  %475 = vst [vmem:[%s384_s23 + $0x78] sm:$0xff] %v474_v15 }
  0x1d PF: > { %p3046_p7 = scmp.ge.s32.totalorder %s4404_s27, 1  ;;  %p480_p8 = scmp.lt.s32.totalorder %s4404_s27, 3 }
  0x1f   : > { %p481_p9 = pnand %p3046_p7, %p480_p8 }
  0x20   : > { %v3049_v16 = vld [vmem:[%s5339_s1 + $0x20] sm:$0xff] (!%p481_p9)  ;;  %v3050_v17 = vld [vmem:[%s5339_s1 + $0x28] sm:$0xff] (!%p481_p9)  ;;  %v3051_v18 = vld [vmem:[%s5339_s1 + $0x30] sm:$0xff] (!%p481_p9)  ;;  %s487_s20 = sand.u32 (!%p481_p9), 1, %s4396_s25   ;;  %vm554_vm0 = vcmask (!%p481_p9), 261120   ;;  %v4406_v47 = vmov (!%p481_p9), 0.0  }
  0x21   : > { %484 = sbr.rel (%p481_p9) target bundleno = 1585 (0x631), region = 106  ;;  %v3981_v19 = vpack.c.bf16 (!%p481_p9), %v3050_v17, %v3049_v16  ;;  %v3052_v20 = vld [vmem:[%s5339_s1 + $0x38] sm:$0xff] (!%p481_p9)  ;;  %s4550_s23 = sshll.u32 (!%p481_p9), %s487_s20, 7  ;;  %v545_v22 = vld [vmem:[%s5339_s1] sm:$0xff] (!%p481_p9)  ;;  %v546_v23 = vld [vmem:[%s5339_s1 + $0x8] sm:$0xff] (!%p481_p9)  ;;  %vm974_vm1 = vcmask (!%p481_p9), 523264  }
  0x22   : > { %v3985_v21 = vpack.c.bf16 (!%p481_p9), %v3052_v20, %v3051_v18  ;;  %s4559_s25 = scalar_lea.vmem (!%p481_p9), [#allocation4], %s4550_s23  ;;  %v3989_v25 = vpack.c.bf16 (!%p481_p9), %v546_v23, %v545_v22  ;;  %v547_v26 = vld [vmem:[%s5339_s1 + $0x10] sm:$0xff] (!%p481_p9)  ;;  %v548_v27 = vld [vmem:[%s5339_s1 + $0x18] sm:$0xff] (!%p481_p9)  ;;  %v3068_v29 = vld [vmem:[%s5339_s1 + $0x40] sm:$0xff] (!%p481_p9)  ;;  %s5271_s28 = scalar_lea.vmem (!%p481_p9), [#allocation5], %s4550_s23 }
  0x23   : > { %3982 = vmatprep.subr.bf16.mxu0 (!%p481_p9), %v3981_v19  ;;  %v529_v24 = vld [vmem:[%s4559_s25] sm:$0xff] (!%p481_p9)  ;;  %v531_v28 = vld [vmem:[%s4559_s25 + $0x10] sm:$0xff] (!%p481_p9)  ;;  %v3993_v31 = vpack.c.bf16 (!%p481_p9), %v548_v27, %v547_v26  ;;  %v3082_v33 = vld [vmem:[%s5341_s3 + $0x48] sm:$0xff] (!%p481_p9) }
  0x24   : > { %3984 = vmatpush3.bf16.msra.mxu0 (!%p481_p9), %v3981_v19  ;;  %3530 = vmatprep.mubr.msk.f32.mxu0 (!%p481_p9), %vm554_vm0, %v529_v24  ;;  %v533_v30 = vld [vmem:[%s4559_s25 + $0x20] sm:$0xff] (!%p481_p9)  ;;  %v3069_v34 = vld [vmem:[%s5339_s1 + $0x48] sm:$0xff] (!%p481_p9)  ;;  %v3083_v36 = vld [vmem:[%s5341_s3 + $0x50] sm:$0xff] (!%p481_p9) }
  0x25   : > { %3986 = vmatprep.subr.bf16.mxu0 (!%p481_p9), %v3985_v21  ;;  %v3081_v32 = vld [vmem:[%s5341_s3 + $0x40] sm:$0xff] (!%p481_p9)  ;;  %v3084_v37 = vld [vmem:[%s5341_s3 + $0x58] sm:$0xff] (!%p481_p9)  ;;  %v535_v39 = vld [vmem:[%s4559_s25 + $0x30] sm:$0xff] (!%p481_p9)  ;;  %v3997_v41 = vpack.c.bf16 (!%p481_p9), %v3069_v34, %v3068_v29 }
  0x26   : > { %v4005_v35 = vpack.c.bf16 (!%p481_p9), %v3082_v33, %v3081_v32  ;;  %v4009_v38 = vpack.c.bf16 (!%p481_p9), %v3084_v37, %v3083_v36  ;;  %v537_v40 = vld [vmem:[%s4559_s25 + $0x40] sm:$0xff] (!%p481_p9)  ;;  %v539_v42 = vld [vmem:[%s4559_s25 + $0x50] sm:$0xff] (!%p481_p9)  ;;  %v3071_v46 = vld [vmem:[%s5339_s1 + $0x58] sm:$0xff] (!%p481_p9) }
  0x27   : > { %v541_v43 = vld [vmem:[%s4559_s25 + $0x60] sm:$0xff] (!%p481_p9)  ;;  %v543_v44 = vld [vmem:[%s4559_s25 + $0x70] sm:$0xff] (!%p481_p9)  ;;  %v530_v48 = vld [vmem:[%s4559_s25 + $0x8] sm:$0xff] (!%p481_p9) }
  0x28   : > { %3988 = vmatpush3.bf16.msra.mxu0 %v3985_v21  ;;  %4006 = vmatprep.subr.bf16.mxu1 %v4005_v35  ;;  %v3070_v45 = vld [vmem:[%s5339_s1 + $0x50] sm:$0xff]  ;;  %v532_v49 = vld [vmem:[%s4559_s25 + $0x18] sm:$0xff]  ;;  %v534_v51 = vld [vmem:[%s4559_s25 + $0x28] sm:$0xff]  ;;  %s5354_s23 = sadd.s32 (%p4507_p5), 4294967295, %s4404_s27  }
  0x29   : > { %3990 = vmatprep.subr.bf16.mxu0 %v3989_v25  ;;  %4008 = vmatpush3.bf16.msra.mxu1 %v4005_v35  ;;  %v4001_v50 = vpack.c.bf16 %v3071_v46, %v3070_v45  ;;  %v536_v52 = vld [vmem:[%s4559_s25 + $0x38] sm:$0xff]  ;;  %v538_v53 = vld [vmem:[%s4559_s25 + $0x48] sm:$0xff]  ;;  %v3085_v57 = vld [vmem:[%s5341_s3 + $0x60] sm:$0xff]  ;;  %s3265_s30 = sshll.u32 (%p4507_p5), %s5354_s23, 3 }
  0x2a   : > { %4010 = vmatprep.subr.bf16.mxu1 %v4009_v38  ;;  %v540_v54 = vld [vmem:[%s4559_s25 + $0x58] sm:$0xff]  ;;  %v542_v55 = vld [vmem:[%s4559_s25 + $0x68] sm:$0xff]  ;;  %v3087_v60 = vld [vmem:[%s5341_s3 + $0x70] sm:$0xff]  ;;  %s2891_s16 = scalar_lea.vmem (%p4507_p5), %s5351_s13, %s3265_s30 }
  0x2b   : > { %3531 = vmatmul.mubr.msk.f32.vlgmr.msra.gmra.mrb[0].mxu0 %vm554_vm0, %v531_v28  ;;  %v544_v56 = vld [vmem:[%s4559_s25 + $0x78] sm:$0xff]  ;;  %v3086_v58 = vld [vmem:[%s5341_s3 + $0x68] sm:$0xff]  ;;  %v957_v63 = vld [vmem:[%s5341_s3] sm:$0xff] }
  0x2c   : > { %3992 = vmatpush3.bf16.msra.mxu0 %v3989_v25  ;;  %3533 = vmatprep.mubr.msk.f32.mxu0 %vm554_vm0, %v533_v30  ;;  %v4013_v59 = vpack.c.bf16 %v3086_v58, %v3085_v57  ;;  %v3088_v61 = vld [vmem:[%s5341_s3 + $0x78] sm:$0xff]  ;;  %v958_v0 = vld [vmem:[%s5341_s3 + $0x8] sm:$0xff]  ;;  %v3109_v2 = vld [vmem:[%s5343_s5 + $0x40] sm:$0xff] }
  0x2d   : > { %3994 = vmatprep.subr.bf16.mxu0 %v3993_v31  ;;  %4012 = vmatpush3.bf16.msra.mxu1 %v4009_v38  ;;  %v4017_v62 = vpack.c.bf16 %v3088_v61, %v3087_v60  ;;  %v4021_v1 = vpack.c.bf16 %v958_v0, %v957_v63  ;;  %v3110_v3 = vld [vmem:[%s5343_s5 + $0x48] sm:$0xff]  ;;  %v3111_v4 = vld [vmem:[%s5343_s5 + $0x50] sm:$0xff]  ;;  %v3112_v6 = vld [vmem:[%s5343_s5 + $0x58] sm:$0xff] }
  0x2e   : > { %4014 = vmatprep.subr.bf16.mxu1 %v4013_v59  ;;  %v4053_v5 = vpack.c.bf16 %v3110_v3, %v3109_v2  ;;  %v4057_v7 = vpack.c.bf16 %v3112_v6, %v3111_v4  ;;  %v4664_v8 = vld [vmem:[%s5340_s2] ss:$0 sm:$0xff]  ;;  %v959_v15 = vld [vmem:[%s5341_s3 + $0x10] sm:$0xff]  ;;  %v960_v16 = vld [vmem:[%s5341_s3 + $0x18] sm:$0xff] }
  0x2f   : > { %3534 = vmatmul.mubr.msk.f32.gmra.mrb[2].mxu0 %vm554_vm0, %v535_v39  ;;  %v4025_v20 = vpack.c.bf16 %v960_v16, %v959_v15  ;;  %v961_v22 = vld [vmem:[%s5341_s3 + $0x20] sm:$0xff]  ;;  %v962_v23 = vld [vmem:[%s5341_s3 + $0x28] sm:$0xff]  ;;  %v963_v29 = vld [vmem:[%s5341_s3 + $0x30] sm:$0xff] }
  0x30   : > { %3536 = vmatprep.mubr.msk.f32.mxu0 %vm554_vm0, %v537_v40  ;;  %3996 = vmatpush3.bf16.msra.mxu0 %v3993_v31  ;;  %v4029_v27 = vpack.c.bf16 %v962_v23, %v961_v22  ;;  %v964_v30 = vld [vmem:[%s5341_s3 + $0x38] sm:$0xff]  ;;  %v3096_v34 = vld [vmem:[%s5341_s3 + $0x80] sm:$0xff]  ;;  %v3097_v35 = vld [vmem:[%s5341_s3 + $0x88] sm:$0xff] }
  0x31   : > { %3998 = vmatprep.subr.bf16.mxu0 %v3997_v41  ;;  %4016 = vmatpush3.bf16.msra.mxu1 %v4013_v59  ;;  %v4033_v33 = vpack.c.bf16 %v964_v30, %v963_v29  ;;  %v4037_v37 = vpack.c.bf16 %v3097_v35, %v3096_v34  ;;  %v3098_v39 = vld [vmem:[%s5341_s3 + $0x90] sm:$0xff]  ;;  %v3099_v40 = vld [vmem:[%s5341_s3 + $0x98] sm:$0xff]  ;;  %v3100_v45 = vld [vmem:[%s5341_s3 + $0xa0] sm:$0xff] }
  0x32   : > { %4018 = vmatprep.subr.bf16.mxu1 %v4017_v62  ;;  %v3101_v46 = vld [vmem:[%s5341_s3 + $0xa8] sm:$0xff]  ;;  %v3115_v58 = vld [vmem:[%s5343_s5 + $0x70] sm:$0xff]  ;;  %v3116_v59 = vld [vmem:[%s5343_s5 + $0x78] sm:$0xff] }
  0x33   : > { %3537 = vmatmul.mubr.msk.f32.gmra.mrb[4].mxu0 %vm554_vm0, %v539_v42  ;;  %v4065_v60 = vpack.c.bf16 %v3116_v59, %v3115_v58  ;;  %v1284_v61 = vld [vmem:[%s5343_s5] sm:$0xff]  ;;  %v3133_v2 = vld [vmem:[%s5345_s7 + $0x50] sm:$0xff]  ;;  %v3134_v4 = vld [vmem:[%s5345_s7 + $0x58] sm:$0xff] }
  0x34   : > { %3539 = vmatprep.mubr.msk.f32.mxu0 %vm554_vm0, %v541_v43  ;;  %v4041_v43 = vpack.c.bf16 %v3099_v40, %v3098_v39  ;;  %v3131_v0 = vld [vmem:[%s5345_s7 + $0x40] sm:$0xff]  ;;  %v1290_v30 = vld [vmem:[%s5343_s5 + $0x30] sm:$0xff]  ;;  %v3123_v40 = vld [vmem:[%s5343_s5 + $0x98] sm:$0xff] }
  0x35   : > { %4020 = vmatpush3.bf16.msra.mxu1 %v4017_v62  ;;  %v1285_v62 = vld [vmem:[%s5343_s5 + $0x8] sm:$0xff]  ;;  %v3135_v6 = vld [vmem:[%s5345_s7 + $0x60] sm:$0xff]  ;;  %v3122_v39 = vld [vmem:[%s5343_s5 + $0x90] sm:$0xff] }
  0x36   : > { %4022 = vmatprep.subr.bf16.mxu1 %v4021_v1  ;;  %v4069_v63 = vpack.c.bf16 %v1285_v62, %v1284_v61  ;;  %v3120_v35 = vld [vmem:[%s5343_s5 + $0x80] sm:$0xff]  ;;  %v3138_v58 = vld [vmem:[%s5345_s7 + $0x78] sm:$0xff]  ;;  %v1562_v61 = vld [vmem:[%s5345_s7 + $0x8] sm:$0xff] }
  0x37   : > { %3540 = vmatmul.mubr.msk.f32.gmra.mrb[6].mxu0 %vm554_vm0, %v543_v44 }
  0x38   : > { %3550 = vmatprep.mubr.f32.mxu0 %v4406_v47 }
  0x3b   : > { %3551 = vmatmul.mubr.msk.f32.vlgmr.msra.gmra.mrb[0].mxu0 %vm554_vm0, %v530_v48 }
  0x3c   : > { %4000 = vmatpush3.bf16.msra.mxu0 %v3997_v41  ;;  %3553 = vmatprep.mubr.msk.f32.mxu0 %vm554_vm0, %v532_v49 }
  0x3d   : > { %4002 = vmatprep.subr.bf16.mxu0 %v4001_v50 }
  0x3f   : > { %3554 = vmatmul.mubr.msk.f32.gmra.mrb[2].mxu0 %vm554_vm0, %v534_v51 }
  0x40   : > { %3556 = vmatprep.mubr.msk.f32.mxu0 %vm554_vm0, %v536_v52  ;;  %4004 = vmatpush3.bf16.msra.mxu0 %v4001_v50  ;;  %v3102_v50 = vld [vmem:[%s5341_s3 + $0xb0] sm:$0xff] }
  0x41   : > { %4054 = vmatprep.subr.bf16.mxu0 %v4053_v5 }
  0x43   : > { %3557 = vmatmul.mubr.msk.f32.gmra.mrb[4].mxu0 %vm554_vm0, %v538_v53 }
  0x44   : > { %3559 = vmatprep.mubr.msk.f32.mxu0 %vm554_vm0, %v540_v54 }
  0x47   : > { %3560 = vmatmul.mubr.msk.f32.gmra.mrb[6].mxu0 %vm554_vm0, %v542_v55 }
  0x48   : > { %3570 = vmatprep.mubr.msk.f32.mxu0 %vm554_vm0, %v530_v48 }
  0x4b   : > { %3571 = vmatmul.mubr.msk.f32.vlgmr.msra.gmra.mrb[0].mxu0 %vm554_vm0, %v532_v49  ;;  %v4045_v49 = vpack.c.bf16 %v3101_v46, %v3100_v45  ;;  %v3124_v45 = vld [vmem:[%s5343_s5 + $0xa0] sm:$0xff]  ;;  %v3125_v46 = vld [vmem:[%s5343_s5 + $0xa8] sm:$0xff] }
  0x4c   : > { %3573 = vmatprep.mubr.msk.f32.mxu0 %vm554_vm0, %v534_v51  ;;  %4056 = vmatpush3.bf16.msra.mxu0 %v4053_v5  ;;  %v3103_v51 = vld [vmem:[%s5341_s3 + $0xb8] sm:$0xff]  ;;  %v4105_v5 = vpack.c.bf16 %v3134_v4, %v3133_v2  ;;  %v1563_v4 = vld [vmem:[%s5345_s7 + $0x10] sm:$0xff] }
  0x4d   : > { %4058 = vmatprep.subr.bf16.mxu0 %v4057_v7 }
  0x4f   : > { %3574 = vmatmul.mubr.msk.f32.gmra.mrb[2].mxu0 %vm554_vm0, %v536_v52  ;;  %v4049_v52 = vpack.c.bf16 %v3103_v51, %v3102_v50  ;;  %v3126_v50 = vld [vmem:[%s5343_s5 + $0xb0] sm:$0xff]  ;;  %v3127_v51 = vld [vmem:[%s5343_s5 + $0xb8] sm:$0xff] }
  0x50   : > { %3576 = vmatprep.mubr.msk.f32.mxu0 %vm554_vm0, %v538_v53  ;;  %4060 = vmatpush3.bf16.msra.mxu0 %v4057_v7  ;;  %v3136_v7 = vld [vmem:[%s5345_s7 + $0x68] sm:$0xff] }
  0x53   : > { %3577 = vmatmul.mubr.msk.f32.gmra.mrb[4].mxu0 %vm554_vm0, %v540_v54 }
  0x54   : > { %3579 = vmatprep.mubr.msk.f32.mxu0 %vm554_vm0, %v542_v55  ;;  %v3113_v55 = vld [vmem:[%s5343_s5 + $0x60] sm:$0xff] }
  0x57   : > { %3580 = vmatmul.mubr.msk.f32.gmra.mrb[6].mxu0 %vm554_vm0, %v544_v56  ;;  %v3114_v56 = vld [vmem:[%s5343_s5 + $0x68] sm:$0xff] }
  0x58   : > { %v4061_v57 = vpack.c.bf16 %v3114_v56, %v3113_v55 }
  0x5a   : > { %4062 = vmatprep.subr.bf16.mxu0 %v4061_v57 }
  0x5b   : > { %4064 = vmatpush3.bf16.msra.mxu0 %v4061_v57  ;;  %v3137_v57 = vld [vmem:[%s5345_s7 + $0x70] sm:$0xff] }
  0x5c   : > { %4066 = vmatprep.subr.bf16.mxu0 %v4065_v60  ;;  %v4113_v59 = vpack.c.bf16 %v3138_v58, %v3137_v57  ;;  %v3149_v57 = vld [vmem:[%s5345_s7 + $0xb0] sm:$0xff]  ;;  %v3150_v58 = vld [vmem:[%s5345_s7 + $0xb8] sm:$0xff] }
  0x5f   : > { %4068 = vmatpush3.bf16.msra.mxu0 %v4065_v60  ;;  %v1561_v60 = vld [vmem:[%s5345_s7] sm:$0xff] }
  0x60   : > { %4070 = vmatprep.subr.bf16.mxu0 %v4069_v63  ;;  %v4117_v62 = vpack.c.bf16 %v1562_v61, %v1561_v60  ;;  %v3162_v60 = vld [vmem:[%s5347_s9 + $0x40] sm:$0xff]  ;;  %v3163_v61 = vld [vmem:[%s5347_s9 + $0x48] sm:$0xff] }
 0x11e   : > { %v3572_v9 = vpop.f32.mrb[0].mxu0 }
 0x11f   : > { %v887_v10 = vpop.f32.mrb[1].mxu0  ;;  %v942_v36 = vadd.f32 %v3572_v9, %v4664_v8  ;;  %v3108_v9 = vld [vmem:[%s5342_s4] ss:$0 sm:$0xff] }
 0x120   : > { %v4667_v11 = vadd.f32 %v4664_v8, %v887_v10 }
 0x121   : > { %v4727_v41 = vmax.f32 %v942_v36, 0.0  ;;  %v3121_v36 = vld [vmem:[%s5343_s5 + $0x88] sm:$0xff] }
 0x122   : > { %v949_v12 = vmax.f32 %v4667_v11, 0.0  ;;  %v3575_v13 = vpop.f32.mrb[2].mxu0 }
 0x123   : > { %v897_v14 = vpop.f32.mrb[3].mxu0  ;;  %v944_v38 = vadd.f32 %v3575_v13, %v4664_v8 }
 0x124   : > { %v4677_v17 = vadd.f32 %v4664_v8, %v897_v14  ;;  %3598 = vmatprep.mubr.msk.f32.mxu1 %vm974_vm1, %v949_v12 }
 0x125   : > { %v4730_v44 = vmax.f32 %v944_v38, 0.0  ;;  %v4085_v38 = vpack.c.bf16 %v3121_v36, %v3120_v35  ;;  %v3157_v36 = vld [vmem:[%s5345_s7 + $0xf0] sm:$0xff] }
 0x126   : > { %v951_v18 = vmax.f32 %v4677_v17, 0.0  ;;  %v3578_v19 = vpop.f32.mrb[4].mxu0 }
 0x127   : > { %v907_v21 = vpop.f32.mrb[5].mxu0  ;;  %v946_v42 = vadd.f32 %v3578_v19, %v4664_v8 }
 0x128   : > { %v4690_v24 = vadd.f32 %v4664_v8, %v907_v21  ;;  %3599 = vmatmul.mubr.msk.f32.vlgmr.msra.gmra.mrb[0].mxu1 %vm974_vm1, %v951_v18  ;;  %v1287_v21 = vld [vmem:[%s5343_s5 + $0x18] sm:$0xff] }
 0x129   : > { %4024 = vmatpush3.bf16.msra.mxu1 %v4021_v1  ;;  %v4742_v48 = vmax.f32 %v946_v42, 0.0  ;;  %v3132_v1 = vld [vmem:[%s5345_s7 + $0x48] sm:$0xff] }
 0x12a   : > { %v953_v25 = vmax.f32 %v4690_v24, 0.0  ;;  %v3581_v26 = vpop.f32.mrb[6].mxu0  ;;  %4026 = vmatprep.subr.bf16.mxu1 %v4025_v20  ;;  %v4101_v3 = vpack.c.bf16 %v3132_v1, %v3131_v0 }
 0x12b   : > { %v917_v28 = vpop.f32.mrb[7].mxu0  ;;  %v4755_v53 = vadd.f32 %v3581_v26, %v4664_v8 }
 0x12c   : > { %v4703_v31 = vadd.f32 %v4664_v8, %v917_v28  ;;  %3601 = vmatprep.mubr.msk.f32.mxu1 %vm974_vm1, %v953_v25  ;;  %v4109_v8 = vpack.c.bf16 %v3136_v7, %v3135_v6  ;;  %v1289_v28 = vld [vmem:[%s5343_s5 + $0x28] sm:$0xff] }
 0x12d   : > { %4028 = vmatpush3.bf16.msra.mxu1 %v4025_v20  ;;  %v956_v54 = vmax.f32 %v4755_v53, 0.0  ;;  %v1286_v20 = vld [vmem:[%s5343_s5 + $0x10] sm:$0xff] }
 0x12e   : > { %v955_v32 = vmax.f32 %v4703_v31, 0.0  ;;  %4030 = vmatprep.subr.bf16.mxu1 %v4029_v27  ;;  %v4073_v26 = vpack.c.bf16 %v1287_v21, %v1286_v20  ;;  %v3151_v21 = vld [vmem:[%s5345_s7 + $0xc0] sm:$0xff] }
 0x130   : > { %3602 = vmatmul.mubr.msk.f32.gmra.mrb[2].mxu1 %vm974_vm1, %v955_v32 }
 0x131   : > { %4032 = vmatpush3.bf16.msra.mxu1 %v4029_v27  ;;  %3620 = vmatprep.mubr.f32.mxu1 %v4406_v47  ;;  %v1288_v27 = vld [vmem:[%s5343_s5 + $0x20] sm:$0xff] }
 0x132   : > { %4034 = vmatprep.subr.bf16.mxu1 %v4033_v33  ;;  %v4077_v29 = vpack.c.bf16 %v1289_v28, %v1288_v27  ;;  %v3153_v28 = vld [vmem:[%s5345_s7 + $0xd0] sm:$0xff] }
 0x135   : > { %4036 = vmatpush3.bf16.msra.mxu1 %v4033_v33  ;;  %v1291_v33 = vld [vmem:[%s5343_s5 + $0x38] sm:$0xff] }
 0x136   : > { %4038 = vmatprep.subr.bf16.mxu1 %v4037_v37  ;;  %v4081_v34 = vpack.c.bf16 %v1291_v33, %v1290_v30  ;;  %v3155_v33 = vld [vmem:[%s5345_s7 + $0xe0] sm:$0xff] }
 0x138   : > { %3621 = vmatmul.mubr.msk.f32.vlgmr.msra.gmra.mrb[0].mxu1 %vm974_vm1, %v4727_v41 }
 0x139   : > { %3623 = vmatprep.mubr.msk.f32.mxu1 %vm974_vm1, %v4730_v44  ;;  %4040 = vmatpush3.bf16.msra.mxu1 %v4037_v37 }
 0x13a   : > { %4042 = vmatprep.subr.bf16.mxu1 %v4041_v43 }
 0x13c   : > { %3624 = vmatmul.mubr.msk.f32.gmra.mrb[2].mxu1 %vm974_vm1, %v4742_v48 }
 0x13d   : > { %4044 = vmatpush3.bf16.msra.mxu1 %v4041_v43  ;;  %3642 = vmatprep.mubr.msk.f32.mxu1 %vm974_vm1, %v4727_v41  ;;  %v4089_v43 = vpack.c.bf16 %v3123_v40, %v3122_v39  ;;  %v3143_v39 = vld [vmem:[%s5345_s7 + $0x80] sm:$0xff]  ;;  %v3144_v40 = vld [vmem:[%s5345_s7 + $0x88] sm:$0xff] }
 0x13e   : > { %4046 = vmatprep.subr.bf16.mxu1 %v4045_v49 }
 0x141   : > { %4048 = vmatpush3.bf16.msra.mxu1 %v4045_v49  ;;  %v4093_v49 = vpack.c.bf16 %v3125_v46, %v3124_v45  ;;  %v3145_v45 = vld [vmem:[%s5345_s7 + $0x90] sm:$0xff]  ;;  %v3146_v46 = vld [vmem:[%s5345_s7 + $0x98] sm:$0xff] }
 0x142   : > { %4050 = vmatprep.subr.bf16.mxu1 %v4049_v52 }
 0x145   : > { %4052 = vmatpush3.bf16.msra.mxu1 %v4049_v52  ;;  %v4097_v52 = vpack.c.bf16 %v3127_v51, %v3126_v50  ;;  %v3147_v50 = vld [vmem:[%s5345_s7 + $0xa0] sm:$0xff]  ;;  %v3148_v51 = vld [vmem:[%s5345_s7 + $0xa8] sm:$0xff] }
 0x146   : > { %4102 = vmatprep.subr.bf16.mxu1 %v4101_v3 }
 0x148   : > { %3643 = vmatmul.mubr.msk.f32.vlgmr.msra.gmra.mrb[0].mxu1 %vm974_vm1, %v4730_v44 }
 0x149   : > { %3645 = vmatprep.mubr.msk.f32.mxu1 %vm974_vm1, %v4742_v48  ;;  %4104 = vmatpush3.bf16.msra.mxu1 %v4101_v3 }
 0x14a   : > { %4106 = vmatprep.subr.bf16.mxu1 %v4105_v5 }
 0x14c   : > { %3646 = vmatmul.mubr.msk.f32.gmra.mrb[2].mxu1 %vm974_vm1, %v956_v54 }
 0x14d   : > { %4108 = vmatpush3.bf16.msra.mxu1 %v4105_v5  ;;  %v1564_v5 = vld [vmem:[%s5345_s7 + $0x18] sm:$0xff] }
 0x14e   : > { %4110 = vmatprep.subr.bf16.mxu1 %v4109_v8 }
 0x151   : > { %4112 = vmatpush3.bf16.msra.mxu1 %v4109_v8  ;;  %v4121_v8 = vpack.c.bf16 %v1564_v5, %v1563_v4  ;;  %v3188_v5 = vld [vmem:[%s5347_s9 + $0xd0] sm:$0xff] }
 0x152   : > { %4114 = vmatprep.subr.bf16.mxu1 %v4113_v59 }
 0x155   : > { %4116 = vmatpush3.bf16.msra.mxu1 %v4113_v59  ;;  %v4161_v59 = vpack.c.bf16 %v3150_v58, %v3149_v57 }
 0x156   : > { %4118 = vmatprep.subr.bf16.mxu1 %v4117_v62 }
 0x21b   : > { %v3644_v10 = vpop.f32.mrb[0].mxu1 }
 0x21c   : > { %v1246_v13 = vpop.f32.mrb[1].mxu1  ;;  %v1277_v37 = vadd.f32 %v3644_v10, %v3108_v9  ;;  %v1566_v10 = vld [vmem:[%s5345_s7 + $0x28] sm:$0xff] }
 0x21d   : > { %v4804_v14 = vadd.f32 %v3108_v9, %v1246_v13 }
 0x21e   : > { %v4847_v42 = vmax.f32 %v1277_v37, 0.0  ;;  %v3158_v37 = vld [vmem:[%s5345_s7 + $0xf8] sm:$0xff] }
 0x21f   : > { %v1280_v15 = vmax.f32 %v4804_v14, 0.0  ;;  %v3647_v16 = vpop.f32.mrb[2].mxu1  ;;  %v1933_v14 = vld [vmem:[%s5347_s9 + $0x18] sm:$0xff] }
 0x220   : > { %v1256_v19 = vpop.f32.mrb[3].mxu1  ;;  %v4865_v55 = vadd.f32 %v3647_v16, %v3108_v9  ;;  %v1567_v16 = vld [vmem:[%s5345_s7 + $0x30] sm:$0xff] }
 0x221   : > { %v4813_v22 = vadd.f32 %v3108_v9, %v1256_v19  ;;  %3664 = vmatprep.mubr.msk.f32.mxu0 %vm974_vm1, %v1280_v15  ;;  %v1565_v9 = vld [vmem:[%s5345_s7 + $0x20] sm:$0xff]  ;;  %v1568_v19 = vld [vmem:[%s5345_s7 + $0x38] sm:$0xff] }
 0x222   : > { %v1283_v56 = vmax.f32 %v4865_v55, 0.0  ;;  %v4125_v13 = vpack.c.bf16 %v1566_v10, %v1565_v9  ;;  %v4129_v20 = vpack.c.bf16 %v1568_v19, %v1567_v16  ;;  %v3167_v9 = vld [vmem:[%s5347_s9 + $0x68] sm:$0xff]  ;;  %v1936_v55 = vld [vmem:[%s5347_s9 + $0x30] sm:$0xff] }
 0x223   : > { %v1282_v23 = vmax.f32 %v4813_v22, 0.0  ;;  %v3191_v16 = vld [vmem:[%s5347_s9 + $0xe8] sm:$0xff] }
 0x225   : > { %3665 = vmatmul.mubr.msk.f32.vlgmr.msra.gmra.mrb[8].mxu0 %vm974_vm1, %v1282_v23 }
 0x226   : > { %4072 = vmatpush3.bf16.msra.mxu0 %v4069_v63  ;;  %3683 = vmatprep.mubr.f32.mxu0 %v4406_v47  ;;  %v3130_v63 = vld [vmem:[%s5344_s6] ss:$0 sm:$0xff] }
 0x227   : > { %4074 = vmatprep.subr.bf16.mxu0 %v4073_v26 }
 0x22a   : > { %4076 = vmatpush3.bf16.msra.mxu0 %v4073_v26  ;;  %v3152_v26 = vld [vmem:[%s5345_s7 + $0xc8] sm:$0xff] }
 0x22b   : > { %4078 = vmatprep.subr.bf16.mxu0 %v4077_v29  ;;  %v4133_v27 = vpack.c.bf16 %v3152_v26, %v3151_v21  ;;  %v3169_v21 = vld [vmem:[%s5347_s9 + $0x78] sm:$0xff]  ;;  %v3192_v26 = vld [vmem:[%s5347_s9 + $0xf0] sm:$0xff] }
 0x22e   : > { %4080 = vmatpush3.bf16.msra.mxu0 %v4077_v29  ;;  %v3154_v29 = vld [vmem:[%s5345_s7 + $0xd8] sm:$0xff] }
 0x22f   : > { %4082 = vmatprep.subr.bf16.mxu0 %v4081_v34  ;;  %v4137_v30 = vpack.c.bf16 %v3154_v29, %v3153_v28  ;;  %v3193_v28 = vld [vmem:[%s5347_s9 + $0xf8] sm:$0xff]  ;;  %v1930_v29 = vld [vmem:[%s5347_s9] sm:$0xff] }
 0x232   : > { %4084 = vmatpush3.bf16.msra.mxu0 %v4081_v34  ;;  %v3156_v34 = vld [vmem:[%s5345_s7 + $0xe8] sm:$0xff] }
 0x233   : > { %4086 = vmatprep.subr.bf16.mxu0 %v4085_v38  ;;  %v4141_v35 = vpack.c.bf16 %v3156_v34, %v3155_v33  ;;  %v4209_v33 = vpack.c.bf16 %v3193_v28, %v3192_v26  ;;  %v3202_v26 = vld [vmem:[%s5349_s11 + $0x48] sm:$0xff]  ;;  %v3233_v28 = vld [vmem:[%s5349_s11 + $0xc0] sm:$0xff] }
 0x235   : > { %3684 = vmatmul.mubr.msk.f32.vlgmr.msra.gmra.mrb[8].mxu0 %vm974_vm1, %v4847_v42 }
 0x236   : > { %4088 = vmatpush3.bf16.msra.mxu0 %v4085_v38  ;;  %3702 = vmatprep.mubr.msk.f32.mxu0 %vm974_vm1, %v4847_v42  ;;  %v4145_v38 = vpack.c.bf16 %v3158_v37, %v3157_v36  ;;  %v3179_v36 = vld [vmem:[%s5347_s9 + $0x88] sm:$0xff] }
 0x237   : > { %4090 = vmatprep.subr.bf16.mxu0 %v4089_v43 }
 0x23a   : > { %4092 = vmatpush3.bf16.msra.mxu0 %v4089_v43  ;;  %v4149_v43 = vpack.c.bf16 %v3144_v40, %v3143_v39 }
 0x23b   : > { %4094 = vmatprep.subr.bf16.mxu0 %v4093_v49 }
 0x23e   : > { %4096 = vmatpush3.bf16.msra.mxu0 %v4093_v49  ;;  %v4153_v49 = vpack.c.bf16 %v3146_v46, %v3145_v45 }
 0x23f   : > { %4098 = vmatprep.subr.bf16.mxu0 %v4097_v52 }
 0x242   : > { %4100 = vmatpush3.bf16.msra.mxu0 %v4097_v52  ;;  %v4157_v52 = vpack.c.bf16 %v3148_v51, %v3147_v50 }
 0x245   : > { %3703 = vmatmul.mubr.msk.f32.vlgmr.msra.gmra.mrb[8].mxu0 %vm974_vm1, %v1283_v56 }
 0x318   : > { %v3704_v0 = vpop.f32.mrb[8].mxu0 }
 0x319   : > { %v1557_v1 = vadd.f32 %v3704_v0, %v3130_v63  ;;  %v1538_v2 = vpop.f32.mrb[9].mxu0  ;;  %v3187_v0 = vld [vmem:[%s5347_s9 + $0xc8] sm:$0xff] }
 0x31a   : > { %v1556_v3 = vadd.f32 %v3130_v63, %v1538_v2  ;;  %v3186_v63 = vld [vmem:[%s5347_s9 + $0xc0] sm:$0xff]  ;;  %v3164_v2 = vld [vmem:[%s5347_s9 + $0x50] sm:$0xff] }
 0x31b   : > { %v1559_v7 = vmax.f32 %v1557_v1, 0.0  ;;  %v4197_v1 = vpack.c.bf16 %v3187_v0, %v3186_v63  ;;  %v3180_v0 = vld [vmem:[%s5347_s9 + $0x90] sm:$0xff] }
 0x31c   : > { %v1558_v6 = vmax.f32 %v1556_v3, 0.0  ;;  %v3165_v3 = vld [vmem:[%s5347_s9 + $0x58] sm:$0xff] }
 0x31d   : > { %v4169_v4 = vpack.c.bf16 %v3165_v3, %v3164_v2 }
 0x31e   : > { %3721 = vmatprep.mubr.msk.f32.mxu1 %vm974_vm1, %v1558_v6 }
 0x31f   : > { %3722 = vmatmul.mubr.msk.f32.vlgmr.msra.gmra.mrb[4].mxu1 %vm974_vm1, %v1559_v7 }
 0x320   : > { %4120 = vmatpush3.bf16.msra.mxu1 %v4117_v62  ;;  %3740 = vmatprep.mubr.f32.mxu1 %v4406_v47  ;;  %v4165_v62 = vpack.c.bf16 %v3163_v61, %v3162_v60 }
 0x321   : > { %4122 = vmatprep.subr.bf16.mxu1 %v4121_v8 }
 0x322   : > { %4166 = vmatprep.subr.bf16.mxu0 %v4165_v62 }
 0x323   : > { %4168 = vmatpush3.bf16.msra.mxu0 %v4165_v62  ;;  %v1932_v62 = vld [vmem:[%s5347_s9 + $0x10] sm:$0xff] }
 0x324   : > { %4124 = vmatpush3.bf16.msra.mxu1 %v4121_v8  ;;  %4170 = vmatprep.subr.bf16.mxu0 %v4169_v4  ;;  %v3166_v8 = vld [vmem:[%s5347_s9 + $0x60] sm:$0xff] }
 0x325   : > { %4126 = vmatprep.subr.bf16.mxu1 %v4125_v13  ;;  %v4173_v10 = vpack.c.bf16 %v3167_v9, %v3166_v8 }
 0x327   : > { %4172 = vmatpush3.bf16.msra.mxu0 %v4169_v4  ;;  %v4185_v4 = vpack.c.bf16 %v1933_v14, %v1932_v62  ;;  %v3225_v14 = vld [vmem:[%s5349_s11 + $0x80] sm:$0xff] }
 0x328   : > { %4128 = vmatpush3.bf16.msra.mxu1 %v4125_v13  ;;  %v3190_v13 = vld [vmem:[%s5347_s9 + $0xe0] sm:$0xff]  ;;  %4174 = vmatprep.subr.bf16.mxu0 %v4173_v10 }
 0x329   : > { %4130 = vmatprep.subr.bf16.mxu1 %v4129_v20  ;;  %v4205_v19 = vpack.c.bf16 %v3191_v16, %v3190_v13  ;;  %v3184_v13 = vld [vmem:[%s5347_s9 + $0xb0] sm:$0xff]  ;;  %v3185_v16 = vld [vmem:[%s5347_s9 + $0xb8] sm:$0xff] }
 0x32b   : > { %4176 = vmatpush3.bf16.msra.mxu0 %v4173_v10 }
 0x32c   : > { %4132 = vmatpush3.bf16.msra.mxu1 %v4129_v20  ;;  %v3168_v20 = vld [vmem:[%s5347_s9 + $0x70] sm:$0xff] }
 0x32d   : > { %4134 = vmatprep.subr.bf16.mxu1 %v4133_v27 }
 0x32f   : > { %3741 = vmatmul.mubr.msk.f32.vlgmr.msra.gmra.mrb[4].mxu1 %vm974_vm1, %v1558_v6 }
 0x330   : > { %4136 = vmatpush3.bf16.msra.mxu1 %v4133_v27  ;;  %3759 = vmatprep.mubr.msk.f32.mxu1 %vm974_vm1, %v1559_v7  ;;  %v4177_v27 = vpack.c.bf16 %v3169_v21, %v3168_v20  ;;  %v4225_v20 = vpack.c.bf16 %v3185_v16, %v3184_v13  ;;  %v3201_v21 = vld [vmem:[%s5349_s11 + $0x40] sm:$0xff] }
 0x331   : > { %4138 = vmatprep.subr.bf16.mxu1 %v4137_v30 }
 0x332   : > { %4178 = vmatprep.subr.bf16.mxu0 %v4177_v27 }
 0x333   : > { %4180 = vmatpush3.bf16.msra.mxu0 %v4177_v27  ;;  %v4229_v27 = vpack.c.bf16 %v3202_v26, %v3201_v21 }
 0x334   : > { %4140 = vmatpush3.bf16.msra.mxu1 %v4137_v30  ;;  %v1931_v30 = vld [vmem:[%s5347_s9 + $0x8] sm:$0xff] }
 0x335   : > { %4142 = vmatprep.subr.bf16.mxu1 %v4141_v35  ;;  %v4181_v34 = vpack.c.bf16 %v1931_v30, %v1930_v29  ;;  %v3234_v29 = vld [vmem:[%s5349_s11 + $0xc8] sm:$0xff] }
 0x336   : > { %v4261_v30 = vpack.c.bf16 %v3234_v29, %v3233_v28 }
 0x337   : > { %4182 = vmatprep.subr.bf16.mxu0 %v4181_v34 }
 0x338   : > { %4144 = vmatpush3.bf16.msra.mxu1 %v4141_v35  ;;  %v3178_v35 = vld [vmem:[%s5347_s9 + $0x80] sm:$0xff] }
 0x339   : > { %4146 = vmatprep.subr.bf16.mxu1 %v4145_v38  ;;  %v4213_v37 = vpack.c.bf16 %v3179_v36, %v3178_v35  ;;  %v3235_v36 = vld [vmem:[%s5349_s11 + $0xd0] sm:$0xff] }
 0x33c   : > { %4148 = vmatpush3.bf16.msra.mxu1 %v4145_v38  ;;  %v3142_v38 = vld [vmem:[%s5346_s8] ss:$0 sm:$0xff] }
 0x33d   : > { %4150 = vmatprep.subr.bf16.mxu1 %v4149_v43 }
 0x33f   : > { %3760 = vmatmul.mubr.f32.vlgmr.msra.gmra.mrb[6].mxu1 %v4406_v47 }
 0x340   : > { %4152 = vmatpush3.bf16.msra.mxu1 %v4149_v43  ;;  %3778 = vmatprep.mubr.msk.f32.mxu1 %vm974_vm1, %v1558_v6  ;;  %v3189_v6 = vld [vmem:[%s5347_s9 + $0xd8] sm:$0xff] }
 0x341   : > { %4154 = vmatprep.subr.bf16.mxu1 %v4153_v49 }
 0x344   : > { %4156 = vmatpush3.bf16.msra.mxu1 %v4153_v49 }
 0x345   : > { %4158 = vmatprep.subr.bf16.mxu1 %v4157_v52 }
 0x348   : > { %4160 = vmatpush3.bf16.msra.mxu1 %v4157_v52 }
 0x349   : > { %4162 = vmatprep.subr.bf16.mxu1 %v4161_v59 }
 0x34c   : > { %4164 = vmatpush3.bf16.msra.mxu1 %v4161_v59 }
 0x34d   : > { %4198 = vmatprep.subr.bf16.mxu1 %v4197_v1 }
 0x34f   : > { %3779 = vmatmul.mubr.msk.f32.vlgmr.msra.gmra.mrb[6].mxu1 %vm974_vm1, %v1559_v7  ;;  %v4201_v7 = vpack.c.bf16 %v3189_v6, %v3188_v5  ;;  %v1934_v6 = vld [vmem:[%s5347_s9 + $0x20] sm:$0xff] }
 0x350   : > { %4200 = vmatpush3.bf16.msra.mxu1 %v4197_v1  ;;  %v3181_v1 = vld [vmem:[%s5347_s9 + $0x98] sm:$0xff] }
 0x351   : > { %4202 = vmatprep.subr.bf16.mxu1 %v4201_v7  ;;  %v4217_v8 = vpack.c.bf16 %v3181_v1, %v3180_v0  ;;  %v3177_v0 = vld [vmem:[%s5348_s10] ss:$0 sm:$0xff] }
 0x354   : > { %4204 = vmatpush3.bf16.msra.mxu1 %v4201_v7  ;;  %v1935_v7 = vld [vmem:[%s5347_s9 + $0x28] sm:$0xff] }
 0x355   : > { %4206 = vmatprep.subr.bf16.mxu1 %v4205_v19  ;;  %v4189_v9 = vpack.c.bf16 %v1935_v7, %v1934_v6 }
 0x358   : > { %4208 = vmatpush3.bf16.msra.mxu1 %v4205_v19 }
 0x359   : > { %4210 = vmatprep.subr.bf16.mxu1 %v4209_v33 }
 0x35c   : > { %4212 = vmatpush3.bf16.msra.mxu1 %v4209_v33  ;;  %v3203_v33 = vld [vmem:[%s5349_s11 + $0x50] sm:$0xff] }
 0x35d   : > { %4214 = vmatprep.subr.bf16.mxu1 %v4213_v37 }
 0x402   : > { %v3742_v39 = vpop.f32.mrb[4].mxu1 }
 0x403   : > { %v1741_v40 = vadd.f32 %v3742_v39, %v3142_v38  ;;  %v1725_v43 = vpop.f32.mrb[5].mxu1  ;;  %v3205_v39 = vld [vmem:[%s5349_s11 + $0x60] sm:$0xff] }
 0x404   : > { %v1740_v45 = vadd.f32 %v3142_v38, %v1725_v43 }
 0x405   : > { %v1743_v46 = vmax.f32 %v1741_v40, 0.0  ;;  %v3206_v40 = vld [vmem:[%s5349_s11 + $0x68] sm:$0xff] }
 0x406   : > { %v1742_v49 = vmax.f32 %v1740_v45, 0.0  ;;  %v4237_v43 = vpack.c.bf16 %v3206_v40, %v3205_v39  ;;  %v3237_v45 = vld [vmem:[%s5349_s11 + $0xe0] sm:$0xff]  ;;  %v3228_v39 = vld [vmem:[%s5349_s11 + $0x98] sm:$0xff] }
 0x407   : > { %1745 = vst.msk [vmem:[#allocation2 + $0x10] sm:$0xff] %vm974_vm1, %v1743_v46  ;;  %v3238_v46 = vld [vmem:[%s5349_s11 + $0xe8] sm:$0xff] }
 0x408   : > { %1744 = vst.msk [vmem:[#allocation2] sm:$0xff] %vm974_vm1, %v1742_v49  ;;  %v4269_v49 = vpack.c.bf16 %v3238_v46, %v3237_v45  ;;  %v2369_v45 = vld [vmem:[%s5349_s11 + $0x20] sm:$0xff]  ;;  %v2370_v46 = vld [vmem:[%s5349_s11 + $0x28] sm:$0xff] }
 0x40f   : > { %v1921_v50 = vld [vmem:[#allocation2] sm:$0xff] }
 0x410   : > { %v1925_v51 = vadd.f32 %v1921_v50, %v1280_v15  ;;  %v1923_v15 = vld [vmem:[#allocation2 + $0x10] sm:$0xff] }
 0x411   : > { %v1927_v5 = vadd.f32 %v1923_v15, %v1282_v23  ;;  %v3182_v23 = vld [vmem:[%s5347_s9 + $0xa0] sm:$0xff]  ;;  %v3207_v50 = vld [vmem:[%s5349_s11 + $0x70] sm:$0xff]  ;;  %v3226_v15 = vld [vmem:[%s5349_s11 + $0x88] sm:$0xff] }
 0x412   : > { %3797 = vmatprep.mubr.msk.f32.mxu0 %vm974_vm1, %v1925_v51 }
 0x422   : > { %v3780_v52 = vpop.f32.mrb[6].mxu1 }
 0x423   : > { %v1915_v57 = vadd.f32 %v3780_v52, %v3142_v38  ;;  %v1905_v58 = vpop.f32.mrb[7].mxu1 }
 0x424   : > { %v1914_v59 = vadd.f32 %v3142_v38, %v1905_v58  ;;  %v3240_v58 = vld [vmem:[%s5349_s11 + $0xf8] sm:$0xff] }
 0x425   : > { %v1917_v60 = vmax.f32 %v1915_v57, 0.0  ;;  %v3239_v57 = vld [vmem:[%s5349_s11 + $0xf0] sm:$0xff] }
 0x426   : > { %v1916_v61 = vmax.f32 %v1914_v59, 0.0  ;;  %v4273_v59 = vpack.c.bf16 %v3240_v58, %v3239_v57  ;;  %v2371_v57 = vld [vmem:[%s5349_s11 + $0x30] sm:$0xff]  ;;  %v2372_v58 = vld [vmem:[%s5349_s11 + $0x38] sm:$0xff] }
 0x427   : > { %1920 = vst.msk [vmem:[#allocation2 + $0x18] sm:$0xff] %vm974_vm1, %v1917_v60  ;;  %v2365_v60 = vld [vmem:[%s5349_s11] sm:$0xff] }
 0x428   : > { %1919 = vst.msk [vmem:[#allocation2 + $0x8] sm:$0xff] %vm974_vm1, %v1916_v61  ;;  %v2366_v61 = vld [vmem:[%s5349_s11 + $0x8] sm:$0xff] }
 0x429   : > { %v4245_v62 = vpack.c.bf16 %v2366_v61, %v2365_v60  ;;  %v3232_v61 = vld [vmem:[%s5349_s11 + $0xb8] sm:$0xff] }
 0x42e   : > { %v1924_v3 = vld [vmem:[#allocation2 + $0x18] sm:$0xff] }
 0x42f   : > { %v1922_v63 = vld [vmem:[#allocation2 + $0x8] sm:$0xff]  ;;  %v1928_v22 = vadd.f32 %v1924_v3, %v1283_v56  ;;  %v1937_v56 = vld [vmem:[%s5347_s9 + $0x38] sm:$0xff] }
 0x430   : > { %v1926_v2 = vadd.f32 %v1922_v63, %v4847_v42  ;;  %v3183_v42 = vld [vmem:[%s5347_s9 + $0xa8] sm:$0xff]  ;;  %v4193_v19 = vpack.c.bf16 %v1937_v56, %v1936_v55  ;;  %v5146_v63 = vpack.c.bf16 %v3226_v15, %v3225_v14  ;;  %v4257_v14 = vpack.c.bf16 %v2372_v58, %v2371_v57 }
 0x431   : > { %v4221_v10 = vpack.c.bf16 %v3183_v42, %v3182_v23 }
 0x432   : > { %3798 = vmatmul.mubr.msk.f32.vlgmr.msra.gmra.mrb[10].mxu0 %vm974_vm1, %v1926_v2  ;;  %3841 = vmatprep.mubr.msk.f32.mxu1 %vm974_vm1, %v1926_v2 }
 0x433   : > { %4184 = vmatpush3.bf16.msra.mxu0 %v4181_v34  ;;  %3800 = vmatprep.mubr.msk.f32.mxu0 %vm974_vm1, %v1927_v5  ;;  %v3204_v34 = vld [vmem:[%s5349_s11 + $0x58] sm:$0xff] }
 0x434   : > { %3842 = vmatmul.mubr.msk.f32.vlgmr.msra.gmra.mrb[8].mxu1 %vm974_vm1, %v1927_v5  ;;  %4186 = vmatprep.subr.bf16.mxu0 %v4185_v4  ;;  %v4233_v35 = vpack.c.bf16 %v3204_v34, %v3203_v33  ;;  %v2367_v33 = vld [vmem:[%s5349_s11 + $0x10] sm:$0xff]  ;;  %v2368_v34 = vld [vmem:[%s5349_s11 + $0x18] sm:$0xff] }
 0x435   : > { %4216 = vmatpush3.bf16.msra.mxu1 %v4213_v37  ;;  %3844 = vmatprep.mubr.msk.f32.mxu1 %vm974_vm1, %v1928_v22  ;;  %v3236_v37 = vld [vmem:[%s5349_s11 + $0xd8] sm:$0xff]  ;;  %v4249_v11 = vpack.c.bf16 %v2368_v34, %v2367_v33 }
 0x436   : > { %3801 = vmatmul.mubr.msk.f32.gmra.mrb[12].mxu0 %vm974_vm1, %v1928_v22  ;;  %4218 = vmatprep.subr.bf16.mxu1 %v4217_v8  ;;  %v4265_v38 = vpack.c.bf16 %v3236_v37, %v3235_v36 }
 0x437   : > { %4188 = vmatpush3.bf16.msra.mxu0 %v4185_v4  ;;  %3819 = vmatprep.mubr.f32.mxu0 %v4406_v47 }
 0x438   : > { %3845 = vmatmul.mubr.f32.gmra.mrb[10].mxu1 %v4406_v47  ;;  %4190 = vmatprep.subr.bf16.mxu0 %v4189_v9 }
 0x439   : > { %4220 = vmatpush3.bf16.msra.mxu1 %v4217_v8  ;;  %3863 = vmatprep.mubr.msk.f32.mxu1 %vm974_vm1, %v1925_v51 }
 0x43a   : > { %4222 = vmatprep.subr.bf16.mxu1 %v4221_v10 }
 0x43b   : > { %4192 = vmatpush3.bf16.msra.mxu0 %v4189_v9 }
 0x43c   : > { %4194 = vmatprep.subr.bf16.mxu0 %v4193_v19 }
 0x43d   : > { %4224 = vmatpush3.bf16.msra.mxu1 %v4221_v10 }
 0x43e   : > { %4226 = vmatprep.subr.bf16.mxu1 %v4225_v20 }
 0x43f   : > { %4196 = vmatpush3.bf16.msra.mxu0 %v4193_v19 }
 0x440   : > { %4230 = vmatprep.subr.bf16.mxu0 %v4229_v27 }
 0x441   : > { %4228 = vmatpush3.bf16.msra.mxu1 %v4225_v20 }
 0x442   : > { %3820 = vmatmul.mubr.msk.f32.vlgmr.msra.gmra.mrb[10].mxu0 %vm974_vm1, %v1925_v51  ;;  %4262 = vmatprep.subr.bf16.mxu1 %v4261_v30  ;;  %v3208_v51 = vld [vmem:[%s5349_s11 + $0x78] sm:$0xff] }
 0x443   : > { %3822 = vmatprep.mubr.msk.f32.mxu0 %vm974_vm1, %v1926_v2  ;;  %4232 = vmatpush3.bf16.msra.mxu0 %v4229_v27  ;;  %v4241_v52 = vpack.c.bf16 %v3208_v51, %v3207_v50  ;;  %v3230_v50 = vld [vmem:[%s5349_s11 + $0xa8] sm:$0xff] }
 0x444   : > { %3864 = vmatmul.mubr.msk.f32.vlgmr.msra.gmra.mrb[8].mxu1 %vm974_vm1, %v1926_v2  ;;  %4234 = vmatprep.subr.bf16.mxu0 %v4233_v35 }
 0x445   : > { %3866 = vmatprep.mubr.msk.f32.mxu1 %vm974_vm1, %v1927_v5  ;;  %4264 = vmatpush3.bf16.msra.mxu1 %v4261_v30 }
 0x446   : > { %3823 = vmatmul.mubr.msk.f32.gmra.mrb[12].mxu0 %vm974_vm1, %v1927_v5  ;;  %4266 = vmatprep.subr.bf16.mxu1 %v4265_v38 }
 0x447   : > { %4236 = vmatpush3.bf16.msra.mxu0 %v4233_v35 }
 0x448   : > { %3867 = vmatmul.mubr.msk.f32.gmra.mrb[10].mxu1 %vm974_vm1, %v1928_v22  ;;  %4238 = vmatprep.subr.bf16.mxu0 %v4237_v43 }
 0x449   : > { %4268 = vmatpush3.bf16.msra.mxu1 %v4265_v38  ;;  %v3227_v38 = vld [vmem:[%s5349_s11 + $0x90] sm:$0xff] }
 0x44a   : > { %4270 = vmatprep.subr.bf16.mxu1 %v4269_v49 }
 0x44b   : > { %4240 = vmatpush3.bf16.msra.mxu0 %v4237_v43 }
 0x44c   : > { %4242 = vmatprep.subr.bf16.mxu0 %v4241_v52 }
 0x44d   : > { %4272 = vmatpush3.bf16.msra.mxu1 %v4269_v49  ;;  %v4281_v49 = vpack.c.bf16 %v3228_v39, %v3227_v38 }
 0x44e   : > { %4274 = vmatprep.subr.bf16.mxu1 %v4273_v59 }
 0x44f   : > { %4244 = vmatpush3.bf16.msra.mxu0 %v4241_v52  ;;  %v4253_v52 = vpack.c.bf16 %v2370_v46, %v2369_v45 }
 0x450   : > { %4246 = vmatprep.subr.bf16.mxu0 %v4245_v62 }
 0x451   : > { %4276 = vmatpush3.bf16.msra.mxu1 %v4273_v59 }
 0x452   : > { %4293 = vmatprep.subr.bf16.mxu1 %v5146_v63 }
 0x515   : > { %v3821_v1 = vpop.f32.mrb[10].mxu0 }
 0x516   : > { %v2136_v2 = vadd.f32 %v3821_v1, %v3177_v0  ;;  %v2110_v3 = vpop.f32.mrb[11].mxu0  ;;  %v3224_v1 = vld [vmem:[%s5350_s12] ss:$0 sm:$0xff] }
 0x517   : > { %v2135_v4 = vadd.f32 %v3177_v0, %v2110_v3  ;;  %v3865_v5 = vpop.f32.mrb[8].mxu1 }
 0x518   : > { %v2140_v6 = vmax.f32 %v2136_v2, 0.0  ;;  %v2336_v7 = vadd.f32 %v3865_v5, %v3177_v0  ;;  %v2316_v8 = vpop.f32.mrb[9].mxu1 }
 0x519   : > { %v2139_v22 = vmax.f32 %v2135_v4, 0.0  ;;  %v2335_v23 = vadd.f32 %v3177_v0, %v2316_v8  ;;  %v3824_v42 = vpop.f32.mrb[12].mxu0 }
 0x51a   : > { %2144 = vst.msk [vmem:[#allocation3 + $0x10] sm:$0xff] %vm974_vm1, %v2140_v6  ;;  %v2340_v9 = vmax.f32 %v2336_v7, 0.0  ;;  %v2138_v55 = vadd.f32 %v3824_v42, %v3177_v0  ;;  %v2120_v56 = vpop.f32.mrb[13].mxu0 }
 0x51b   : > { %2143 = vst.msk [vmem:[#allocation3] sm:$0xff] %vm974_vm1, %v2139_v22  ;;  %v2339_v10 = vmax.f32 %v2335_v23, 0.0  ;;  %v2137_v13 = vadd.f32 %v3177_v0, %v2120_v56  ;;  %v3868_v16 = vpop.f32.mrb[10].mxu1 }
 0x51c   : > { %2345 = vst.msk [vmem:[#allocation3 + $0x18] sm:$0xff] %vm974_vm1, %v2340_v9  ;;  %v2142_v19 = vmax.f32 %v2138_v55, 0.0  ;;  %v2338_v20 = vadd.f32 %v3868_v16, %v3177_v0  ;;  %v2326_v21 = vpop.f32.mrb[11].mxu1 }
 0x51d   : > { %2344 = vst.msk [vmem:[#allocation3 + $0x8] sm:$0xff] %vm974_vm1, %v2339_v10  ;;  %v2141_v26 = vmax.f32 %v2137_v13, 0.0  ;;  %v2337_v27 = vadd.f32 %v3177_v0, %v2326_v21 }
 0x51e   : > { %2146 = vst.msk [vmem:[#allocation3 + $0x30] sm:$0xff] %vm974_vm1, %v2142_v19  ;;  %v2342_v28 = vmax.f32 %v2338_v20, 0.0 }
 0x51f   : > { %2145 = vst.msk [vmem:[#allocation3 + $0x20] sm:$0xff] %vm974_vm1, %v2141_v26  ;;  %v2341_v29 = vmax.f32 %v2337_v27, 0.0 }
 0x520   : > { %2347 = vst.msk [vmem:[#allocation3 + $0x38] sm:$0xff] %vm974_vm1, %v2342_v28 }
 0x521   : > { %2346 = vst.msk [vmem:[#allocation3 + $0x28] sm:$0xff] %vm974_vm1, %v2341_v29  ;;  %v2350_v36 = vld [vmem:[#allocation3 + $0x10] sm:$0xff] }
 0x522   : > { %v2348_v30 = vld [vmem:[#allocation3] sm:$0xff] }
 0x523   : > { %v5168_v35 = vadd.f32 %v2348_v30, %v949_v12  ;;  %v2351_v43 = vld [vmem:[#allocation3 + $0x18] sm:$0xff]  ;;  %v5183_v12 = vadd.f32 %v2350_v36, %v951_v18  ;;  %v3229_v18 = vld [vmem:[%s5349_s11 + $0xa0] sm:$0xff] }
 0x524   : > { %v2349_v37 = vld [vmem:[#allocation3 + $0x8] sm:$0xff]  ;;  %v5198_v17 = vadd.f32 %v2351_v43, %v4730_v44  ;;  %v4285_v60 = vpack.c.bf16 %v3230_v50, %v3229_v18 }
 0x525   : > { %3885 = vmatprep.mubr.msk.f32.mxu0 %vm974_vm1, %v5168_v35  ;;  %v5179_v40 = vadd.f32 %v2349_v37, %v4727_v41  ;;  %v2354_v59 = vld [vmem:[#allocation3 + $0x30] sm:$0xff] }
 0x526   : > { %v2352_v41 = vld [vmem:[#allocation3 + $0x20] sm:$0xff]  ;;  %v2362_v15 = vadd.f32 %v2354_v59, %v955_v32 }
 0x527   : > { %3886 = vmatmul.mubr.msk.f32.vlgmr.msra.gmra.mrb[14].mxu0 %vm974_vm1, %v5179_v40  ;;  %3941 = vmatprep.mubr.msk.f32.mxu1 %vm974_vm1, %v5179_v40  ;;  %v2360_v44 = vadd.f32 %v2352_v41, %v953_v25  ;;  %v3231_v25 = vld [vmem:[%s5349_s11 + $0xb0] sm:$0xff] }
 0x528   : > { %3888 = vmatprep.mubr.msk.f32.mxu0 %vm974_vm1, %v5183_v12  ;;  %4248 = vmatpush3.bf16.msra.mxu0 %v4245_v62  ;;  %v2353_v51 = vld [vmem:[#allocation3 + $0x28] sm:$0xff]  ;;  %v2355_v62 = vld [vmem:[#allocation3 + $0x38] sm:$0xff] }
 0x529   : > { %3942 = vmatmul.mubr.msk.f32.vlgmr.msra.gmra.mrb[12].mxu1 %vm974_vm1, %v5183_v12  ;;  %4250 = vmatprep.subr.bf16.mxu0 %v4249_v11  ;;  %v2361_v24 = vadd.f32 %v2353_v51, %v4742_v48  ;;  %v4289_v48 = vpack.c.bf16 %v3232_v61, %v3231_v25  ;;  %v2363_v0 = vadd.f32 %v2355_v62, %v956_v54 }
 0x52a   : > { %3944 = vmatprep.mubr.msk.f32.mxu1 %vm974_vm1, %v5198_v17  ;;  %4297 = vmatpush3.bf16.msra.mxu1 %v5146_v63 }
 0x52b   : > { %3889 = vmatmul.mubr.msk.f32.gmra.mrb[16].mxu0 %vm974_vm1, %v5198_v17  ;;  %4294 = vmatprep.subr.bf16.mxu1 %v4281_v49 }
 0x52c   : > { %3891 = vmatprep.mubr.msk.f32.mxu0 %vm974_vm1, %v2360_v44  ;;  %4252 = vmatpush3.bf16.msra.mxu0 %v4249_v11 }
 0x52d   : > { %3945 = vmatmul.mubr.msk.f32.gmra.mrb[14].mxu1 %vm974_vm1, %v2360_v44  ;;  %4254 = vmatprep.subr.bf16.mxu0 %v4253_v52 }
 0x52e   : > { %3947 = vmatprep.mubr.msk.f32.mxu1 %vm974_vm1, %v2361_v24  ;;  %4298 = vmatpush3.bf16.msra.mxu1 %v4281_v49 }
 0x52f   : > { %3892 = vmatmul.mubr.msk.f32.gmra.mrb[18].mxu0 %vm974_vm1, %v2361_v24  ;;  %4295 = vmatprep.subr.bf16.mxu1 %v4285_v60 }
 0x530   : > { %3894 = vmatprep.mubr.msk.f32.mxu0 %vm974_vm1, %v2362_v15  ;;  %4256 = vmatpush3.bf16.msra.mxu0 %v4253_v52 }
 0x531   : > { %3948 = vmatmul.mubr.msk.f32.gmra.mrb[16].mxu1 %vm974_vm1, %v2362_v15  ;;  %4258 = vmatprep.subr.bf16.mxu0 %v4257_v14 }
 0x532   : > { %3950 = vmatprep.mubr.msk.f32.mxu1 %vm974_vm1, %v2363_v0  ;;  %4299 = vmatpush3.bf16.msra.mxu1 %v4285_v60 }
 0x533   : > { %3895 = vmatmul.mubr.msk.f32.gmra.mrb[20].mxu0 %vm974_vm1, %v2363_v0  ;;  %4296 = vmatprep.subr.bf16.mxu1 %v4289_v48 }
 0x534   : > { %4260 = vmatpush3.bf16.msra.mxu0 %v4257_v14  ;;  %3913 = vmatprep.mubr.f32.mxu0 %v4406_v47 }
 0x535   : > { %3951 = vmatmul.mubr.f32.gmra.mrb[18].mxu1 %v4406_v47  ;;  %4278 = vmatprep.subr.bf16.mxu0 %v5146_v63 }
 0x536   : > { %3978 = vmatprep.mubr.msk.f32.mxu1 %vm974_vm1, %v2362_v15  ;;  %4300 = vmatpush3.bf16.msra.mxu1 %v4289_v48 }
 0x537   : > { %3914 = vmatmul.mubr.msk.f32.vlgmr.msra.gmra.mrb[14].mxu0 %vm974_vm1, %v5168_v35 }
 0x538   : > { %3916 = vmatprep.mubr.msk.f32.mxu0 %vm974_vm1, %v5179_v40  ;;  %4280 = vmatpush3.bf16.msra.mxu0 %v5146_v63 }
 0x539   : > { %4282 = vmatprep.subr.bf16.mxu0 %v4281_v49 }
 0x53b   : > { %3917 = vmatmul.mubr.msk.f32.gmra.mrb[16].mxu0 %vm974_vm1, %v5183_v12 }
 0x53c   : > { %3919 = vmatprep.mubr.msk.f32.mxu0 %vm974_vm1, %v5198_v17  ;;  %4284 = vmatpush3.bf16.msra.mxu0 %v4281_v49 }
 0x53d   : > { %3979 = vmatmul.mubr.msk.f32.vlgmr.msra.gmra.mrb[18].mxu1 %vm974_vm1, %v2363_v0  ;;  %4286 = vmatprep.subr.bf16.mxu0 %v4285_v60 }
 0x53f   : > { %3920 = vmatmul.mubr.msk.f32.gmra.mrb[18].mxu0 %vm974_vm1, %v2360_v44 }
 0x540   : > { %3922 = vmatprep.mubr.msk.f32.mxu0 %vm974_vm1, %v2361_v24  ;;  %4288 = vmatpush3.bf16.msra.mxu0 %v4285_v60 }
 0x541   : > { %4290 = vmatprep.subr.bf16.mxu0 %v4289_v48 }
 0x543   : > { %3923 = vmatmul.mubr.msk.f32.gmra.mrb[20].mxu0 %vm974_vm1, %v2362_v15 }
 0x544   : > { %4292 = vmatpush3.bf16.msra.mxu0 %v4289_v48  ;;  %3969 = vmatprep.mubr.msk.f32.mxu0 %vm974_vm1, %v5168_v35 }
 0x547   : > { %3970 = vmatmul.mubr.msk.f32.vlgmr.msra.gmra.mrb[22].mxu0 %vm974_vm1, %v5179_v40 }
 0x548   : > { %3972 = vmatprep.mubr.msk.f32.mxu0 %vm974_vm1, %v5183_v12 }
 0x54b   : > { %3973 = vmatmul.mubr.msk.f32.gmra.mrb[24].mxu0 %vm974_vm1, %v5198_v17 }
 0x54c   : > { %3975 = vmatprep.mubr.msk.f32.mxu0 %vm974_vm1, %v2360_v44 }
 0x54f   : > { %3976 = vmatmul.mubr.msk.f32.gmra.mrb[26].mxu0 %vm974_vm1, %v2361_v24 }
 0x5fc   : > { %v3943_v47 = vpop.f32.mrb[12].mxu1 }
 0x5fd   : > { %v2722_v31 = vpop.f32.mrb[13].mxu1 }
 0x600   : > { %v3946_v32 = vpop.f32.mrb[14].mxu1 }
 0x601   : > { %v2732_v53 = vpop.f32.mrb[15].mxu1 }
 0x604   : > { %v3949_v54 = vpop.f32.mrb[16].mxu1 }
 0x605   : > { %v2742_v63 = vpop.f32.mrb[17].mxu1 }
 0x60a   : > { %v3915_v2 = vpop.f32.mrb[14].mxu0 }
 0x60b   : > { %v2623_v3 = vadd.f32 %v3915_v2, %v3224_v1  ;;  %v2577_v4 = vpop.f32.mrb[15].mxu0 }
 0x60c   : > { %v2622_v5 = vadd.f32 %v3224_v1, %v2577_v4 }
 0x60d   : > { %2631 = vst.msk [vmem:[%s5271_s28 + $0x10] sm:$0xff] %vm554_vm0, %v2623_v3 }
 0x60e   : > { %2630 = vst.msk [vmem:[%s5271_s28] sm:$0xff] %vm554_vm0, %v2622_v5  ;;  %v3918_v6 = vpop.f32.mrb[16].mxu0 }
 0x60f   : > { %v2625_v7 = vadd.f32 %v3918_v6, %v3224_v1  ;;  %v2587_v8 = vpop.f32.mrb[17].mxu0 }
 0x610   : > { %v2624_v22 = vadd.f32 %v3224_v1, %v2587_v8  ;;  %v3980_v23 = vpop.f32.mrb[18].mxu1 }
 0x611   : > { %2633 = vst.msk [vmem:[%s5271_s28 + $0x30] sm:$0xff] %vm554_vm0, %v2625_v7  ;;  %v2873_v42 = vadd.f32 %v3980_v23, %v3224_v1  ;;  %v2857_v9 = vpop.f32.mrb[19].mxu1 }
 0x612   : > { %2632 = vst.msk [vmem:[%s5271_s28 + $0x20] sm:$0xff] %vm554_vm0, %v2624_v22  ;;  %v2872_v55 = vadd.f32 %v3224_v1, %v2857_v9  ;;  %v3921_v56 = vpop.f32.mrb[18].mxu0 }
 0x613   : > { %3263 = vst.msk [vmem:[%s5271_s28 + $0x78] sm:$0xff] %vm554_vm0, %v2873_v42  ;;  %v2627_v10 = vadd.f32 %v3921_v56, %v3224_v1  ;;  %v2597_v13 = vpop.f32.mrb[19].mxu0 }
 0x614   : > { %3262 = vst.msk [vmem:[%s5271_s28 + $0x68] sm:$0xff] %vm554_vm0, %v2872_v55  ;;  %v2626_v16 = vadd.f32 %v3224_v1, %v2597_v13  ;;  %v2953_v18 = vld [vmem:[%s5271_s28 + $0x10] sm:$0xff] (%p4507_p5) }
 0x615   : > { %2635 = vst.msk [vmem:[%s5271_s28 + $0x50] sm:$0xff] %vm554_vm0, %v2627_v10  ;;  %v2949_v49 = vld [vmem:[%s5271_s28] sm:$0xff] (%p4507_p5)  ;;  %2954 = vst [vmem:[%s2891_s16 + $0x20] sm:$0xff] (%p4507_p5), %v2953_v18 }
 0x616   : > { %2634 = vst.msk [vmem:[%s5271_s28 + $0x40] sm:$0xff] %vm554_vm0, %v2626_v16  ;;  %v3924_v19 = vpop.f32.mrb[20].mxu0  ;;  %2950 = vst [vmem:[%s2891_s16] sm:$0xff] (%p4507_p5), %v2949_v49 }
 0x617   : > { %v2629_v20 = vadd.f32 %v3924_v19, %v3224_v1  ;;  %v2607_v21 = vpop.f32.mrb[21].mxu0 }
 0x618   : > { %v2628_v26 = vadd.f32 %v3224_v1, %v2607_v21  ;;  %v2961_v44 = vld [vmem:[%s5271_s28 + $0x30] sm:$0xff] (%p4507_p5) }
 0x619   : > { %2637 = vst.msk [vmem:[%s5271_s28 + $0x70] sm:$0xff] %vm554_vm0, %v2629_v20  ;;  %v2957_v51 = vld [vmem:[%s5271_s28 + $0x20] sm:$0xff] (%p4507_p5)  ;;  %2962 = vst [vmem:[%s2891_s16 + $0x60] sm:$0xff] (%p4507_p5), %v2961_v44 }
 0x61a   : > { %2636 = vst.msk [vmem:[%s5271_s28 + $0x60] sm:$0xff] %vm554_vm0, %v2628_v26  ;;  %v3971_v27 = vpop.f32.mrb[22].mxu0  ;;  %2958 = vst [vmem:[%s2891_s16 + $0x40] sm:$0xff] (%p4507_p5), %v2957_v51  ;;  %v2979_v14 = vld [vmem:[%s5271_s28 + $0x78] sm:$0xff] (%p4507_p5) }
 0x61b   : > { %v2833_v28 = vadd.f32 %v3971_v27, %v3943_v47  ;;  %v2827_v29 = vpop.f32.mrb[23].mxu0  ;;  %v2975_v61 = vld [vmem:[%s5271_s28 + $0x68] sm:$0xff] (%p4507_p5)  ;;  %2980 = vst [vmem:[%s2891_s16 + $0xf0] sm:$0xff] (%p4507_p5), %v2979_v14 }
 0x61c   : > { %v2828_v30 = vadd.f32 %v2827_v29, %v2722_v31  ;;  %v2969_v60 = vld [vmem:[%s5271_s28 + $0x50] sm:$0xff] (%p4507_p5)  ;;  %2976 = vst [vmem:[%s2891_s16 + $0xd0] sm:$0xff] (%p4507_p5), %v2975_v61 }
 0x61d   : > { %v2867_v33 = vadd.f32 %v3224_v1, %v2833_v28  ;;  %v2965_v58 = vld [vmem:[%s5271_s28 + $0x40] sm:$0xff] (%p4507_p5)  ;;  %2970 = vst [vmem:[%s2891_s16 + $0xa0] sm:$0xff] (%p4507_p5), %v2969_v60 }
 0x61e   : > { %v2866_v34 = vadd.f32 %v3224_v1, %v2828_v30  ;;  %v3974_v35 = vpop.f32.mrb[24].mxu0  ;;  %2966 = vst [vmem:[%s2891_s16 + $0x80] sm:$0xff] (%p4507_p5), %v2965_v58 }
 0x61f   : > { %3257 = vst.msk [vmem:[%s5271_s28 + $0x18] sm:$0xff] %vm554_vm0, %v2867_v33  ;;  %v2843_v36 = vadd.f32 %v3974_v35, %v3946_v32  ;;  %v2837_v37 = vpop.f32.mrb[25].mxu0 }
 0x620   : > { %3256 = vst.msk [vmem:[%s5271_s28 + $0x8] sm:$0xff] %vm554_vm0, %v2866_v34  ;;  %v2838_v38 = vadd.f32 %v2837_v37, %v2732_v53  ;;  %v2977_v62 = vld [vmem:[%s5271_s28 + $0x70] sm:$0xff] (%p4507_p5) }
 0x621   : > { %v2869_v39 = vadd.f32 %v3224_v1, %v2843_v36  ;;  %v2973_v25 = vld [vmem:[%s5271_s28 + $0x60] sm:$0xff] (%p4507_p5)  ;;  %2978 = vst [vmem:[%s2891_s16 + $0xe0] sm:$0xff] (%p4507_p5), %v2977_v62 }
 0x622   : > { %v2868_v40 = vadd.f32 %v3224_v1, %v2838_v38  ;;  %v3977_v43 = vpop.f32.mrb[26].mxu0  ;;  %2889 = sbr.rel (!%p4507_p5) target bundleno = 1585 (0x631), region = 114  ;;  %2974 = vst [vmem:[%s2891_s16 + $0xc0] sm:$0xff] (%p4507_p5), %v2973_v25 }
 0x623   : > { %3259 = vst.msk [vmem:[%s5271_s28 + $0x38] sm:$0xff] %vm554_vm0, %v2869_v39  ;;  %v2853_v11 = vadd.f32 %v3977_v43, %v3949_v54  ;;  %v2847_v12 = vpop.f32.mrb[27].mxu0 }
 0x624   : > { %3258 = vst.msk [vmem:[%s5271_s28 + $0x28] sm:$0xff] %vm554_vm0, %v2868_v40  ;;  %v2848_v45 = vadd.f32 %v2847_v12, %v2742_v63 }
 0x625   : > { %v2871_v46 = vadd.f32 %v3224_v1, %v2853_v11 }
 0x626   : > { %v2870_v41 = vadd.f32 %v3224_v1, %v2848_v45  ;;  %v2955_v50 = vld [vmem:[%s5271_s28 + $0x18] sm:$0xff] (%p4507_p5) }
 0x627   : > { %3261 = vst.msk [vmem:[%s5271_s28 + $0x58] sm:$0xff] %vm554_vm0, %v2871_v46  ;;  %v2951_v17 = vld [vmem:[%s5271_s28 + $0x8] sm:$0xff] (%p4507_p5)  ;;  %2956 = vst [vmem:[%s2891_s16 + $0x30] sm:$0xff] (%p4507_p5), %v2955_v50 }
 0x628   : > { %3260 = vst.msk [vmem:[%s5271_s28 + $0x48] sm:$0xff] %vm554_vm0, %v2870_v41  ;;  %2952 = vst [vmem:[%s2891_s16 + $0x10] sm:$0xff] (%p4507_p5), %v2951_v17 }
 0x62a   : > { %v2963_v57 = vld [vmem:[%s5271_s28 + $0x38] sm:$0xff] }
 0x62b   : > { %v2959_v52 = vld [vmem:[%s5271_s28 + $0x28] sm:$0xff]  ;;  %2964 = vst [vmem:[%s2891_s16 + $0x70] sm:$0xff] %v2963_v57 }
 0x62c   : > { %2960 = vst [vmem:[%s2891_s16 + $0x50] sm:$0xff] %v2959_v52 }
 0x62e   : > { %v2971_v24 = vld [vmem:[%s5271_s28 + $0x58] sm:$0xff] }
 0x62f   : > { %v2967_v59 = vld [vmem:[%s5271_s28 + $0x48] sm:$0xff]  ;;  %2972 = vst [vmem:[%s2891_s16 + $0xb0] sm:$0xff] %v2971_v24 }
 0x630   : > { %2968 = vst [vmem:[%s2891_s16 + $0x90] sm:$0xff] %v2967_v59 }
 0x631 PF: > { %p20_p10 = scmp.ge.s32.totalorder %s4494_s29, 4   ;;  %s5355_s25 = smov %s4400_s26 }
 0x632   : > { %s5356_s26 = smov %s4505_s15  ;;  %s5357_s27 = smov %s4494_s29 }
 0x633   :  { %22 = sbr.rel (!%p20_p10) target bundleno = 2 (0x2), region = 201 }

</bundles_post_ra>
